<compile_context>
chip_gen: v7x
topology: tpu7x:2x2x1
jax: 0.10.0
libtpu: 0.0.40
codegen_flags: <defaults>
</compile_context>

<pallas_src>
import functools
import math

import jax
import jax.numpy as jnp
from jax.experimental import pallas as pl
from jax.experimental.pallas import tpu as pltpu

_MIB = 1024 * 1024


def _round_up(x, m):
    return ((x + m - 1) // m) * m


# ---------------------------------------------------------------------------
# Hardware introspection (safe fallbacks if the query API is unavailable).
# ---------------------------------------------------------------------------
def _tpu_hw_info():
    """Returns (tensorcores_per_device, vmem_capacity_bytes)."""
    vmem_cap = 64 * _MIB          # conservative default (v7x per-TC VMEM)
    cores = 1
    try:
        vmem_cap = int(pltpu.get_tpu_info().vmem_capacity_bytes)
    except Exception:
        pass
    try:
        kind = jax.devices()[0].device_kind.lower()
        # Megacore-style chips (2 TensorCores behind one device): v4, v5p, v7x.
        if ("v4" in kind) or ("v5p" in kind) or ("7" in kind):
            cores = 2
    except Exception:
        pass
    return cores, vmem_cap


@functools.lru_cache(maxsize=1)
def _single_buffer_supported():
    """Probe whether pipeline_mode=pl.Buffered(1) lowers on this JAX/Mosaic."""
    try:
        def _copy(x_ref, o_ref):
            o_ref[...] = x_ref[...]

        f = pl.pallas_call(
            _copy,
            out_shape=jax.ShapeDtypeStruct((16, 128), jnp.float32),
            grid=(2,),
            in_specs=[pl.BlockSpec((8, 128), lambda i: (0, 0),
                                   pipeline_mode=pl.Buffered(1))],
            out_specs=pl.BlockSpec((8, 128), lambda i: (i, 0)),
        )
        jax.block_until_ready(f(jnp.zeros((8, 128), jnp.float32)))
        return True
    except Exception:
        return False


# ---------------------------------------------------------------------------
# Fused MLP kernel: for one row-tile of x, run every layer back-to-back.
# refs = (x_ref, w1, b1, w2, b2, ..., wn, bn, alpha_ref, o_ref)
# ---------------------------------------------------------------------------
def _fused_mlp_kernel(*refs, n_layers):
    x_ref = refs[0]
    alpha_ref = refs[1 + 2 * n_layers]     # SMEM scalar PReLU slope
    o_ref = refs[2 + 2 * n_layers]

    alpha = alpha_ref[0]                   # hoisted: one SMEM read / broadcast
    h = x_ref[...].astype(jnp.bfloat16)    # bf16 MXU operand
    y = None
    for layer in range(n_layers):
        w_ref = refs[1 + 2 * layer]        # [fi, fo]  bf16 (lane-padded)
        b_ref = refs[2 + 2 * layer]        # [1,  fo]  f32
        # bf16 MXU inputs, f32 accumulation.
        y = jnp.dot(h, w_ref[...], preferred_element_type=jnp.float32)
        y = y + b_ref[...]                 # f32 bias broadcast over rows
        if layer < n_layers - 1:
            y = jnp.where(y > 0, y, alpha * y)   # PReLU in f32
            # TODO(synk): nn.Dropout is identity in eval mode; training-mode
            # stochastic dropout (pltpu.prng_*) is not applied here.
            h = y.astype(jnp.bfloat16)     # carry bf16 activation across layers
    o_ref[...] = y.astype(o_ref.dtype)


# ---------------------------------------------------------------------------
# Row-tile selection: largest tile that fits VMEM; block-count policy is
# generation-aware (single TC -> one big block, megacore -> >=2 blocks only
# when each core still gets >=512 rows).
# ---------------------------------------------------------------------------
def _pick_tm(m_rows, fits, num_cores):
    best = 128
    for cand in (2048, 1024, 512, 256, 128):
        if fits(cand):
            best = cand
            break
    if num_cores >= 2 and m_rows >= 2 * 512:
        # Megacore: keep >=2 'parallel' blocks so both TensorCores get work.
        while best > 512 and (m_rows + best - 1) // best < 2:
            best //= 2
        return best
    # Single TensorCore (v5e/v6e) or small M: grid steps are a sequential loop
    # (~0.35 us each), so collapse to one sublane-aligned block when it fits.
    one_block = _round_up(max(m_rows, 8), 8)
    if m_rows <= best and fits(one_block):
        return one_block
    return best


# ---------------------------------------------------------------------------
# Wrapper: pad rows, build BlockSpecs (full-array single-buffered blocks for
# weights/biases, row-tiled blocks for x / out), single pallas_call.
# ---------------------------------------------------------------------------
def fused_mlp_forward(x, params, alpha, *, dims, out_feats, single_buffer_weights):
    M, in_feats = x.shape
    out_feats_p = dims[-1][1]
    n_layers = len(dims)

    cores, vmem_cap = _tpu_hw_info()
    # Usable scoped-VMEM budget: leave 8 MiB headroom on v7x (64 MiB physical),
    # allow up to ~100 MiB on v5e/v6e (128 MiB physical).
    usable = max(16 * _MIB, min(vmem_cap - 8 * _MIB, 100 * _MIB))

    wbuf = 1 if single_buffer_weights else 2
    weight_bytes = sum(wbuf * (fi * fo * 2 + fo * 4) for fi, fo in dims)
    max_w = max(max(fi, fo) for fi, fo in dims)

    def est(tm):
        e = 2 * tm * in_feats * 4          # double-buffered x tiles (f32)
        e += 2 * tm * out_feats_p * 4      # double-buffered out tiles (f32)
        e += weight_bytes                  # resident weights (bf16) + biases
        e += 2 * tm * max_w * 6            # live f32 y + bf16 h slabs, 2x margin
        return e

    def fits(tm):
        return int(1.25 * est(tm)) <= usable

    # TODO(synk): if the resident weights alone overflow `usable` (hidden ~4K+
    # bf16 on v7x), a K/layer-tiled fallback with an accumulator grid axis is
    # needed; such configs currently just fall back to tm=128 here.
    tm = _pick_tm(M, fits, cores)

    m_pad = _round_up(M, tm)
    if m_pad != M:
        x = jnp.pad(x, ((0, m_pad - M), (0, 0)))
    grid = (m_pad // tm,)

    def _invariant(block_shape):
        # Grid-invariant block: single-buffer it (the block never changes), so
        # only one VMEM copy of each weight/bias is allocated.
        if single_buffer_weights:
            return pl.BlockSpec(block_shape, lambda i: (0, 0),
                                pipeline_mode=pl.Buffered(1))
        return pl.BlockSpec(block_shape, lambda i: (0, 0))

    in_specs = [pl.BlockSpec((tm, in_feats), lambda i: (i, 0))]
    flat_params = []
    for (fi, fo), (w, b) in zip(dims, params):
        in_specs.append(_invariant((fi, fo)))     # whole W
        in_specs.append(_invariant((1, fo)))      # whole b
        flat_params += [w, b]
    in_specs.append(pl.BlockSpec(memory_space=pltpu.MemorySpace.SMEM))  # alpha

    vmem_limit = int(min(max(int(1.25 * est(tm)), 16 * _MIB), usable))

    flops = 2 * m_pad * sum(fi * fo for fi, fo in dims)
    bytes_accessed = (m_pad * in_feats * 4 + m_pad * out_feats_p * 4
                      + sum(fi * fo * 2 + fo * 4 for fi, fo in dims))

    kernel = functools.partial(_fused_mlp_kernel, n_layers=n_layers)

    out = pl.pallas_call(
        kernel,
        out_shape=jax.ShapeDtypeStruct((m_pad, out_feats_p), jnp.float32),
        grid_spec=pltpu.PrefetchScalarGridSpec(
            num_scalar_prefetch=0,
            grid=grid,
            in_specs=in_specs,
            out_specs=pl.BlockSpec((tm, out_feats_p), lambda i: (i, 0)),
        ),
        compiler_params=pltpu.CompilerParams(
            dimension_semantics=("parallel",),
            vmem_limit_bytes=vmem_limit),
        cost_estimate=pl.CostEstimate(flops=flops, transcendentals=0,
                                      bytes_accessed=bytes_accessed),
    )(x, *flat_params, alpha)

    if m_pad != M or out_feats_p != out_feats:
        out = out[:M, :out_feats]
    return out


# ---------------------------------------------------------------------------
# FeedForwardNet (JAX/Pallas port of the PyTorch module)
# ---------------------------------------------------------------------------
def _xavier_uniform(key, out_feats, in_feats, gain):
    # PyTorch: nn.init.xavier_uniform_(weight[out, in], gain)
    bound = gain * math.sqrt(6.0 / (in_feats + out_feats))
    return jax.random.uniform(key, (out_feats, in_feats), jnp.float32,
                              -bound, bound)


class FeedForwardNetPallas:
    """Eval-mode forward of the PyTorch FeedForwardNet, fused into one kernel."""

    def __init__(self, in_feats, hidden, out_feats, n_layers, dropout, key):
        self.n_layers = n_layers
        self.dropout = dropout          # TODO(synk): eval-mode identity only
        self.out_feats = out_feats
        gain = math.sqrt(2.0)           # nn.init.calculate_gain('relu')

        if n_layers == 1:
            dims = [(in_feats, out_feats)]
        else:
            dims = ([(in_feats, hidden)]
                    + [(hidden, hidden)] * (n_layers - 2)
                    + [(hidden, out_feats)])

        # Pad every layer's output width to a multiple of 128 lanes; the next
        # layer's input width follows. Padded weight/bias entries are zero, so
        # the math is identical and the final columns are sliced off.
        dims_p = []
        prev = in_feats
        for (fi, fo) in dims:
            fo_p = _round_up(fo, 128)
            dims_p.append((prev, fo_p))
            prev = fo_p
        self.dims_p = tuple(dims_p)

        self.params = []
        for (fi, fo), (fi_p, fo_p) in zip(dims, dims_p):
            key, sub = jax.random.split(key)
            w = _xavier_uniform(sub, fo, fi, gain)          # [out, in], f32
            # Store W^T = [in, out], zero-padded, pre-cast to bf16 (halves the
            # weight DMA and feeds the MXU at bf16 rate); bias stays f32 [1, out].
            wt = jnp.zeros((fi_p, fo_p), jnp.float32).at[:fi, :fo].set(w.T)
            self.params.append((wt.astype(jnp.bfloat16),
                                jnp.zeros((1, fo_p), jnp.float32)))

        # nn.PReLU() default: one shared parameter initialized to 0.25.
        self.alpha = jnp.array([0.25], dtype=jnp.float32)

        self._forward = jax.jit(functools.partial(
            fused_mlp_forward,
            dims=self.dims_p,
            out_feats=out_feats,
            single_buffer_weights=_single_buffer_supported()))

    def __call__(self, x):
        return self._forward(x, self.params, self.alpha)

    def reference(self, x):
        """Pure-JAX f32 reference using the same (bf16-stored) weights."""
        h = x
        for layer, (w, b) in enumerate(self.params):
            h = h @ w.astype(jnp.float32) + b
            if layer < self.n_layers - 1:
                h = jnp.where(h > 0, h, self.alpha[0] * h)
        return h[:, :self.out_feats]


if __name__ == "__main__":
    key = jax.random.PRNGKey(0)
    k_param, k_x = jax.random.split(key)

    # Small shapes consistent with SIGN node prediction: node features ->
    # hidden -> n_classes.  A non-128 head (40 classes) and a non-tile row
    # count (300) exercise the lane/row padding paths.
    num_nodes, in_feats, hidden, out_feats, n_layers = 300, 128, 256, 40, 3

    net = FeedForwardNetPallas(in_feats, hidden, out_feats, n_layers,
                               dropout=0.5, key=k_param)
    x = jax.random.normal(k_x, (num_nodes, in_feats), jnp.float32)

    y = net(x)
    jax.block_until_ready(y)
    assert y.shape == (num_nodes, out_feats), y.shape

    # Validate against the f32 reference (bf16 MXU path -> relaxed tolerance).
    ref = net.reference(x)
    err = float(jnp.max(jnp.abs(y - ref)))
    scale = float(jnp.max(jnp.abs(ref)))
    assert err <= 0.02 * scale + 0.1, f"max abs err {err} (scale {scale})"

    print("KERNEL_OK")
</pallas_src>

<mosaic_0001>
module attributes {stable_mosaic.version = 11 : i64} {
  func.func @_copy(%arg0: i32, %arg1: memref<8x128xf32, #tpu.memory_space<vmem>>, %arg2: memref<8x128xf32, #tpu.memory_space<vmem>>) attributes {dimension_semantics = [#tpu.dimension_semantics<arbitrary>], iteration_bounds = array<i64: 2>, scalar_prefetch = 0 : i64, scratch_operands = 0 : i64, tpu.core_type = #tpu.core_type<tc>, window_params = [{pipeline_mode = #tpu.pipeline_mode<synchronous>, transform_indices = @transform_0, window_bounds = array<i64: 8, 128>}, {transform_indices = @transform_1, window_bounds = array<i64: 8, 128>}]} {
    %c0 = arith.constant 0 : index
    %c0_0 = arith.constant 0 : index
    %0 = vector.load %arg1[%c0, %c0_0] : memref<8x128xf32, #tpu.memory_space<vmem>>, vector<8x128xf32>
    %c0_1 = arith.constant 0 : index
    %c0_2 = arith.constant 0 : index
    %1 = vector.load %arg2[%c0_1, %c0_2] : memref<8x128xf32, #tpu.memory_space<vmem>>, vector<8x128xf32>
    tpu.vector_store %arg2[%c0_1, %c0_2], %0 {strides = array<i32>} : memref<8x128xf32, #tpu.memory_space<vmem>>, vector<8x128xf32>,
    return
  }
  func.func @transform_0(%arg0: i32) -> (i32, i32) {
    %c0_i32 = arith.constant 0 : i32
    %c0_i32_0 = arith.constant 0 : i32
    %c0_i32_1 = arith.constant 0 : i32
    return %c0_i32, %c0_i32_0 : i32, i32
  }
  func.func @transform_1(%arg0: i32) -> (i32, i32) {
    %c0_i32 = arith.constant 0 : i32
    %c0_i32_0 = arith.constant 0 : i32
    return %arg0, %c0_i32 : i32, i32
  }
}

module attributes {stable_mosaic.version = 11 : i64} {
  func.func @_fused_mlp_kernel(%arg0: i32, %arg1: memref<304x128xf32, #tpu.memory_space<vmem>>, %arg2: memref<128x256xbf16, #tpu.memory_space<vmem>>, %arg3: memref<1x256xf32, #tpu.memory_space<vmem>>, %arg4: memref<256x256xbf16, #tpu.memory_space<vmem>>, %arg5: memref<1x256xf32, #tpu.memory_space<vmem>>, %arg6: memref<256x128xbf16, #tpu.memory_space<vmem>>, %arg7: memref<1x128xf32, #tpu.memory_space<vmem>>, %arg8: memref<1xf32, #tpu.memory_space<smem>>, %arg9: memref<304x128xf32, #tpu.memory_space<vmem>>) attributes {dimension_semantics = [#tpu.dimension_semantics<parallel>], iteration_bounds = array<i64: 1>, scalar_prefetch = 0 : i64, scratch_operands = 0 : i64, tpu.core_type = #tpu.core_type<tc>, window_params = [{transform_indices = @transform_0, window_bounds = array<i64: 304, 128>}, {pipeline_mode = #tpu.pipeline_mode<synchronous>, transform_indices = @transform_1, window_bounds = array<i64: 128, 256>}, {pipeline_mode = #tpu.pipeline_mode<synchronous>, transform_indices = @transform_2, window_bounds = array<i64: 1, 256>}, {pipeline_mode = #tpu.pipeline_mode<synchronous>, transform_indices = @transform_3, window_bounds = array<i64: 256, 256>}, {pipeline_mode = #tpu.pipeline_mode<synchronous>, transform_indices = @transform_4, window_bounds = array<i64: 1, 256>}, {pipeline_mode = #tpu.pipeline_mode<synchronous>, transform_indices = @transform_5, window_bounds = array<i64: 256, 128>}, {pipeline_mode = #tpu.pipeline_mode<synchronous>, transform_indices = @transform_6, window_bounds = array<i64: 1, 128>}, {transform_indices = @transform_7, window_bounds = array<i64: 1>}, {transform_indices = @transform_8, window_bounds = array<i64: 304, 128>}]} {
    %c0 = arith.constant 0 : index
    %0 = memref.load %arg8[%c0] : memref<1xf32, #tpu.memory_space<smem>>
    %c0_0 = arith.constant 0 : index
    %c0_1 = arith.constant 0 : index
    %1 = vector.load %arg1[%c0_0, %c0_1] : memref<304x128xf32, #tpu.memory_space<vmem>>, vector<304x128xf32>
    %2 = arith.truncf %1 : vector<304x128xf32> to vector<304x128xbf16>
    %c0_2 = arith.constant 0 : index
    %c0_3 = arith.constant 0 : index
    %3 = vector.load %arg2[%c0_2, %c0_3] : memref<128x256xbf16, #tpu.memory_space<vmem>>, vector<128x256xbf16>
    %cst = arith.constant dense<0.000000e+00> : vector<304x256xf32>
    %4 = tpu.matmul %2, %3, %cst {dimension_numbers = #tpu.dot_dimension_numbers<[1], [0], [0], [1], [0, 0, 1, 1], [], []>} : vector<304x128xbf16>, vector<128x256xbf16>, vector<304x256xf32> -> vector<304x256xf32>
    %c0_4 = arith.constant 0 : index
    %c0_5 = arith.constant 0 : index
    %5 = vector.load %arg3[%c0_4, %c0_5] : memref<1x256xf32, #tpu.memory_space<vmem>>, vector<1x256xf32>
    %6 = vector.broadcast %5 : vector<1x256xf32> to vector<304x256xf32>
    %7 = arith.addf %4, %6 : vector<304x256xf32>
    %cst_6 = arith.constant 0.000000e+00 : f32
    %8 = vector.broadcast %cst_6 : f32 to vector<304x256xf32>
    %9 = arith.cmpf ogt, %7, %8 : vector<304x256xf32>
    %10 = vector.broadcast %0 : f32 to vector<304x256xf32>
    %11 = arith.mulf %10, %7 : vector<304x256xf32>
    %12 = arith.select %9, %7, %11 : vector<304x256xi1>, vector<304x256xf32>
    %13 = arith.truncf %12 : vector<304x256xf32> to vector<304x256xbf16>
    %c0_7 = arith.constant 0 : index
    %c0_8 = arith.constant 0 : index
    %14 = vector.load %arg4[%c0_7, %c0_8] : memref<256x256xbf16, #tpu.memory_space<vmem>>, vector<256x256xbf16>
    %cst_9 = arith.constant dense<0.000000e+00> : vector<304x256xf32>
    %15 = tpu.matmul %13, %14, %cst_9 {dimension_numbers = #tpu.dot_dimension_numbers<[1], [0], [0], [1], [0, 0, 1, 1], [], []>} : vector<304x256xbf16>, vector<256x256xbf16>, vector<304x256xf32> -> vector<304x256xf32>
    %c0_10 = arith.constant 0 : index
    %c0_11 = arith.constant 0 : index
    %16 = vector.load %arg5[%c0_10, %c0_11] : memref<1x256xf32, #tpu.memory_space<vmem>>, vector<1x256xf32>
    %17 = vector.broadcast %16 : vector<1x256xf32> to vector<304x256xf32>
    %18 = arith.addf %15, %17 : vector<304x256xf32>
    %cst_12 = arith.constant 0.000000e+00 : f32
    %19 = vector.broadcast %cst_12 : f32 to vector<304x256xf32>
    %20 = arith.cmpf ogt, %18, %19 : vector<304x256xf32>
    %21 = vector.broadcast %0 : f32 to vector<304x256xf32>
    %22 = arith.mulf %21, %18 : vector<304x256xf32>
    %23 = arith.select %20, %18, %22 : vector<304x256xi1>, vector<304x256xf32>
    %24 = arith.truncf %23 : vector<304x256xf32> to vector<304x256xbf16>
    %c0_13 = arith.constant 0 : index
    %c0_14 = arith.constant 0 : index
    %25 = vector.load %arg6[%c0_13, %c0_14] : memref<256x128xbf16, #tpu.memory_space<vmem>>, vector<256x128xbf16>
    %cst_15 = arith.constant dense<0.000000e+00> : vector<304x128xf32>
    %26 = tpu.matmul %24, %25, %cst_15 {dimension_numbers = #tpu.dot_dimension_numbers<[1], [0], [0], [1], [0, 0, 1, 1], [], []>} : vector<304x256xbf16>, vector<256x128xbf16>, vector<304x128xf32> -> vector<304x128xf32>
    %c0_16 = arith.constant 0 : index
    %c0_17 = arith.constant 0 : index
    %27 = vector.load %arg7[%c0_16, %c0_17] : memref<1x128xf32, #tpu.memory_space<vmem>>, vector<1x128xf32>
    %28 = vector.broadcast %27 : vector<1x128xf32> to vector<304x128xf32>
    %29 = arith.addf %26, %28 : vector<304x128xf32>
    %c0_18 = arith.constant 0 : index
    %c0_19 = arith.constant 0 : index
    %30 = vector.load %arg9[%c0_18, %c0_19] : memref<304x128xf32, #tpu.memory_space<vmem>>, vector<304x128xf32>
    tpu.vector_store %arg9[%c0_18, %c0_19], %29 {strides = array<i32>} : memref<304x128xf32, #tpu.memory_space<vmem>>, vector<304x128xf32>,
    return
  }
  func.func @transform_0(%arg0: i32) -> (i32, i32) {
    %c0_i32 = arith.constant 0 : i32
    %c0_i32_0 = arith.constant 0 : i32
    return %arg0, %c0_i32 : i32, i32
  }
  func.func @transform_1(%arg0: i32) -> (i32, i32) {
    %c0_i32 = arith.constant 0 : i32
    %c0_i32_0 = arith.constant 0 : i32
    %c0_i32_1 = arith.constant 0 : i32
    return %c0_i32, %c0_i32_0 : i32, i32
  }
  func.func @transform_2(%arg0: i32) -> (i32, i32) {
    %c0_i32 = arith.constant 0 : i32
    %c0_i32_0 = arith.constant 0 : i32
    %c0_i32_1 = arith.constant 0 : i32
    return %c0_i32, %c0_i32_0 : i32, i32
  }
  func.func @transform_3(%arg0: i32) -> (i32, i32) {
    %c0_i32 = arith.constant 0 : i32
    %c0_i32_0 = arith.constant 0 : i32
    %c0_i32_1 = arith.constant 0 : i32
    return %c0_i32, %c0_i32_0 : i32, i32
  }
  func.func @transform_4(%arg0: i32) -> (i32, i32) {
    %c0_i32 = arith.constant 0 : i32
    %c0_i32_0 = arith.constant 0 : i32
    %c0_i32_1 = arith.constant 0 : i32
    return %c0_i32, %c0_i32_0 : i32, i32
  }
  func.func @transform_5(%arg0: i32) -> (i32, i32) {
    %c0_i32 = arith.constant 0 : i32
    %c0_i32_0 = arith.constant 0 : i32
    %c0_i32_1 = arith.constant 0 : i32
    return %c0_i32, %c0_i32_0 : i32, i32
  }
  func.func @transform_6(%arg0: i32) -> (i32, i32) {
    %c0_i32 = arith.constant 0 : i32
    %c0_i32_0 = arith.constant 0 : i32
    %c0_i32_1 = arith.constant 0 : i32
    return %c0_i32, %c0_i32_0 : i32, i32
  }
  func.func @transform_7(%arg0: i32) -> i32 {
    %c0_i32 = arith.constant 0 : i32
    %c0_i32_0 = arith.constant 0 : i32
    return %c0_i32 : i32
  }
  func.func @transform_8(%arg0: i32) -> (i32, i32) {
    %c0_i32 = arith.constant 0 : i32
    %c0_i32_0 = arith.constant 0 : i32
    return %arg0, %c0_i32 : i32, i32
  }
}

</mosaic_0001>

<bundles_post_ra>
// kernel: tpu_custom_call.1
= control target key start
LH: loop header
LB: loop body
LE: loop exit
PB: predicated region body
PF: predicated region fallthrough
CT: control target
= control target key end

     0   :  { %6 = vsyncpa [#allocation3], 0  ;;  %s481_s0 = inlined_call_operand.hbm [shape: f32[8,128], index: 0, kind: input, shape index: {}]   ;;  %s482_s1 = inlined_call_operand.hbm [shape: f32[16,128], index: 1, kind: output, shape index: {}]  }
   0x1   :  { %7 = vsyncpa [#allocation4], 0 }
   0x2   :  { %9 = vsyncpa [#allocation4 + $0x1], 0  ;;  %s351_s6 = smov 0   ;;  %s353_s7 = smov 0  }
   0x3   :  { %s355_s8 = smov 0   ;;  %s357_s9 = smov 0  }
   0x4 LB: > { %s372_s10 = sadd.s32 4294967295, %s337_s9   ;;  %s183_s11 = sadd.s32 4294967294, %s337_s9   ;;  %s337_s9 = sphi %s357_s9, %s498_s9   ;;  %s333_s8 = sphi %s355_s8, %s497_s8   ;;  %s329_s7 = sphi %s353_s7, %s496_s7   ;;  %s325_s6 = sphi %s351_s6, %s495_s6  }
   0x5   : > { %s376_s12 = sadd.s32 1, %s337_s9   ;;  %s43_s13 = sadd.s32 1, %s333_s8 }
   0x6   : > { %s40_s14 = ssub.s32 %s337_s9, %s376_s12  ;;  %p53_p0 = scmp.ne.s32.totalorder %s333_s8, %s329_s7 }
   0x7   : > { %p41_p1 = scmp.eq.s32.totalorder %s40_s14, 0  ;;  %p54_p2 = scmp.eq.s32.totalorder %s372_s10, 1 }
   0x8   : > { %p59_p3 = scmp.ne.s32.totalorder %s329_s7, %s325_s6  ;;  %p60_p4 = scmp.eq.s32.totalorder %s183_s11, 1 }
   0x9   : > { %s387_s15 = scalar_select %p41_p1, %s333_s8, %s43_s13  }
   0xa   : > { %p389_p5 = por %p54_p2, %p53_p0  ;;  %p393_p6 = por %p60_p4, %p59_p3 }
   0xb   : > { %p184_p7 = scmp.ge.s32.totalorder %s337_s9, 1  ;;  %p67_p8 = scmp.lt.s32.totalorder %s337_s9, 3 }
   0xc   : > { %s486_s16 = scalar_select %p389_p5, 1, 0 }
   0xd   : > { %s487_s17 = scalar_select %p393_p6, 1, 0 }
   0xe   : > { %p483_p9 = scmp.eq.s32.totalorder %s372_s10, 0  ;;  %p400_p10 = pnand %p184_p7, %p67_p8 }
   0xf   : > { %s339_s19 = smov [#allocation2]   ;;  %s243_s24 = scalar_lea.hbm %s481_s0, 128 }
  0x10   : > { %s488_s18 = scalar_select %p400_p10, 1, 0 }
  0x11   : > { %s80_s20 = sshll.u32 %s339_s19, 4  ;;  %p199_p11 = pneg %p400_p10  ;;  %s81_s20 = int_to_ptr.vmem [resolvable:$true] %s80_s20 }
  0x12   : > { %p244_p13 = scmp.ne.s32.totalorder %s481_s0, %s243_s24  ;;  %p250_p3 = scmp.lt.u32.totalorder %s243_s24, %s481_s0 }
  0x13   : > { %p408_p12 = pnand %p483_p9, %p199_p11 }
  0x15   : > { %p245_p0 = pneg %p408_p12 }
  0x17   : > { %p246_p1 = pnand %p245_p0, %p244_p13 }
  0x19   : > { %p247_p2 = pneg %p246_p1 }
  0x1b   : > { %p252_p4 = pnand %p250_p3, %p247_p2 }
  0x1d   : > { %255 = shalt.err (!%p252_p4)
}
  0x1e   : > { %s256_s29 = scalar_lea.vmem %s81_s20, 128  ;;  %p264_p9 = scmp.lt.s32.totalorder %s81_s20, %s81_s20 }
  0x1f   : > { %p257_p7 = scmp.ne.s32.totalorder %s81_s20, %s256_s29  ;;  %p265_p6 = scmp.lt.s32.totalorder %s256_s29, %s256_s29 }
  0x21   : > { %p259_p8 = pnand %p257_p7, %p245_p0  ;;  %p266_p5 = por %p265_p6, %p264_p9 }
  0x23   : > { %p260_p11 = pneg %p259_p8 }
  0x25   : > { %p267_p10 = pnand %p266_p5, %p260_p11 }
  0x27   : > { %270 = shalt.err (!%p267_p10)
}
  0x28   : > { %202 = dma.hbm_to_vmem [thread:$0]  (!%p408_p12), %s481_s0, 128, %s81_s20, [#allocation3]  }
  0x29   : > { %p490_p13 = scmp.ne.s32.totalorder %s488_s18, 0 }
  0x2a   : > { %p491_p1 = scmp.eq.s32.totalorder (!%p490_p13), %s372_s10, 0 }
  0x2b   : > { %93 = sbr.rel (%p490_p13) target bundleno = 77 (0x4d), region = 24 }
  0x32   : > { %316 = dma.done.wait (%p491_p1), [#allocation3], 128   ;;  %p492_p0 = pmov %p491_p1 }
  0x33   : > { %s105_s3 = sand.u32 1, %s329_s7   ;;  %s190_s13 = sshll.u32 %s372_s10, 7  ;;  %v108_v0 = vld [vmem:[#allocation2] sm:$0xff] }
  0x34   : > { %318 = vsyncadd (%p492_p0), [#allocation3], 4294967168  ;;  %s188_s4 = sshll.u32 %s105_s3, 3  ;;  %s441_s18 = scalar_lea.hbm %s482_s1, %s190_s13 }
  0x35   : > { %s107_s5 = scalar_lea.vmem [#allocation5], %s188_s4  ;;  %s111_s20 = scalar_lea.sflag [#allocation4], %s105_s3 }
  0x36   : > { %s124_s11 = sshll.u32 %s107_s5, 4  ;;  %109 = vst [vmem:[%s107_s5] sm:$0xff] %v108_v0  ;;  %p493_p6 = scmp.ne.s32.totalorder %s486_s16, 0  ;;  %s436_s11 = int_to_ptr.vmem [resolvable:$true] %s124_s11 }
  0x37   : > { %s271_s21 = scalar_lea.vmem %s436_s11, 128  ;;  %s340_s22 = smov [#allocation5]  }
  0x38   : > { %p272_p5 = scmp.ne.s32.totalorder %s436_s11, %s271_s21  ;;  %s275_s10 = sshll.u32 %s340_s22, 4  ;;  %s276_s10 = int_to_ptr.vmem [resolvable:$false] %s275_s10 }
  0x39   : > { %s277_s23 = scalar_lea.vmem %s276_s10, 256  ;;  %p278_p12 = scmp.lt.s32.totalorder %s436_s11, %s276_s10 }
  0x3a   : > { %p273_p9 = pnand %p272_p5, %p493_p6  ;;  %p279_p2 = scmp.lt.s32.totalorder %s277_s23, %s271_s21 }
  0x3c   : > { %p274_p10 = pneg %p273_p9  ;;  %p280_p3 = por %p279_p2, %p278_p12 }
  0x3e   : > { %p281_p4 = pnand %p280_p3, %p274_p10 }
  0x40   : > { %284 = shalt.err (!%p281_p4)
}
  0x41   : > { %s285_s24 = scalar_lea.hbm %s441_s18, 128  ;;  %s289_s27 = scalar_lea.hbm %s482_s1, 256 }
  0x42   : > { %p286_p7 = scmp.ne.s32.totalorder %s441_s18, %s285_s24  ;;  %p290_p13 = scmp.lt.u32.totalorder %s441_s18, %s482_s1 }
  0x43   : > { %p291_p1 = scmp.lt.u32.totalorder %s289_s27, %s285_s24  ;;  %p293_p5 = scmp.lt.u32.totalorder %s285_s24, %s441_s18 }
  0x44   : > { %p287_p8 = pnand %p286_p7, %p493_p6 }
  0x45   : > { %p292_p0 = por %p291_p1, %p290_p13 }
  0x46   : > { %p288_p11 = pneg %p287_p8 }
  0x47   : > { %p294_p9 = por %p293_p5, %p292_p0 }
  0x49   : > { %p295_p10 = pnand %p294_p9, %p288_p11 }
  0x4b   : > { %298 = shalt.err (!%p295_p10)
}
  0x4c   : > { %197 = dma.vmem_to_hbm [thread:$0]  (%p493_p6), %s436_s11, 128, %s441_s18, %s111_s20  }
  0x4d PF: > { %p209_p12 = scmp.ge.s32.totalorder %s337_s9, 2  ;;  %s136_s30 = sand.u32 1, %s325_s6  }
  0x4e   : > { %p494_p2 = scmp.ne.s32.totalorder %s487_s17, 0  ;;  %s137_s2 = scalar_lea.sflag [#allocation4], %s136_s30 }
  0x50   : > { %p204_p3 = pnand %p209_p12, %p494_p2 }
  0x52   : > { %320 = dma.done.wait (!%p204_p3), %s137_s2, 128  }
  0x53   : > { %322 = vsyncadd (!%p204_p3), %s137_s2, 4294967168  ;;  %p12_p4 = scmp.ge.s32.totalorder %s376_s12, 4   ;;  %s495_s6 = smov %s329_s7 }
  0x54   : > { %s496_s7 = smov %s333_s8  ;;  %s497_s8 = smov %s387_s15 }
  0x55   : > { %s498_s9 = smov %s376_s12  ;;  %14 = sbr.rel (!%p12_p4) target bundleno = 4 (0x4), region = 61 }
  0x5c   :  { %142 = vsyncpa [#allocation3], 1 }
  0x5d   :  { %144 = vsyncpa [#allocation3 + $0x1], 1 }
  0x5e   :  { %145 = vsyncpa [#allocation4], 1 }
  0x5f   :  { %147 = vsyncpa [#allocation4 + $0x1], 1 }

// kernel: fused_mlp_forward.1
= control target key start
LH: loop header
LB: loop body
LE: loop exit
PB: predicated region body
PF: predicated region fallthrough
CT: control target
= control target key end

     0   :  { %v1912_v1 = vmov 0   ;;  %s3162_s1 = inlined_call_operand.vmem [shape: bf16[128,256], index: 1, kind: input, shape index: {}]   ;;  %s3163_s0 = inlined_call_operand.vmem [shape: f32[304,128], index: 0, kind: input, shape index: {}]   ;;  %s3164_s3 = inlined_call_operand.vmem [shape: bf16[256,256], index: 3, kind: input, shape index: {}]   ;;  %s3165_s2 = inlined_call_operand.vmem [shape: f32[1,256], index: 2, kind: input, shape index: {}]   ;;  %s3166_s7 = inlined_call_operand.<no memory space> [shape: f32[1], index: 7, kind: input, shape index: {}]   ;;  %s3167_s5 = inlined_call_operand.vmem [shape: bf16[256,128], index: 5, kind: input, shape index: {}]   ;;  %s3168_s4 = inlined_call_operand.vmem [shape: f32[1,256], index: 4, kind: input, shape index: {}]   ;;  %s3169_s6 = inlined_call_operand.vmem [shape: f32[1,128], index: 6, kind: input, shape index: {}]   ;;  %s3170_s8 = inlined_call_operand.vmem [shape: f32[304,128], index: 8, kind: output, shape index: {}]  }
   0x1   :  { %v1824_v0 = vld [vmem:[%s3162_s1 + $0x4] ss:$8 sps:$4 sm:$0xff]   ;;  %229 = vmatprep.mubr.bf16.mxu0 %v1912_v1  ;;  %329 = vmatprep.mubr.bf16.mxu1 %v1912_v1  ;;  %v1826_v2 = vld [vmem:[%s3162_s1] ss:$8 sps:$4 sm:$0xff]   ;;  %v1827_v3 = vld [vmem:[%s3162_s1 + $0x14] ss:$8 sps:$4 sm:$0xff]  }
   0x2   :  { %197 = vmatprep.subr.bf16.mxu0 %v1824_v0  ;;  %1807 = vmatprep.subr.bf16.mxu1 %v1824_v0  ;;  %v1829_v4 = vld [vmem:[%s3162_s1 + $0x10] ss:$8 sps:$4 sm:$0xff]   ;;  %v1830_v5 = vld [vmem:[%s3162_s1 + $0x24] ss:$8 sps:$4 sm:$0xff]   ;;  %v1832_v6 = vld [vmem:[%s3162_s1 + $0x20] ss:$8 sps:$4 sm:$0xff]  }
   0x3   :  { %198 = vmatpush1.bf16.msra.mxu0 %v1826_v2  ;;  %1815 = vmatpush1.bf16.msra.mxu1 %v1826_v2  ;;  %v1833_v7 = vld [vmem:[%s3162_s1 + $0x34] ss:$8 sps:$4 sm:$0xff]   ;;  %v1835_v8 = vld [vmem:[%s3162_s1 + $0x30] ss:$8 sps:$4 sm:$0xff]   ;;  %v1836_v9 = vld [vmem:[%s3162_s1 + $0x44] ss:$8 sps:$4 sm:$0xff]  }
   0x4   :  { %199 = vmatprep.subr.bf16.mxu0 %v1827_v3  ;;  %1808 = vmatprep.subr.bf16.mxu1 %v1827_v3  ;;  %v1838_v10 = vld [vmem:[%s3162_s1 + $0x40] ss:$8 sps:$4 sm:$0xff]   ;;  %v1839_v11 = vld [vmem:[%s3162_s1 + $0x54] ss:$8 sps:$4 sm:$0xff]   ;;  %v1841_v12 = vld [vmem:[%s3162_s1 + $0x50] ss:$8 sps:$4 sm:$0xff]  }
   0x5   :  { %v1842_v13 = vld [vmem:[%s3162_s1 + $0x64] ss:$8 sps:$4 sm:$0xff]   ;;  %v1844_v14 = vld [vmem:[%s3162_s1 + $0x60] ss:$8 sps:$4 sm:$0xff]   ;;  %v1845_v15 = vld [vmem:[%s3162_s1 + $0x74] ss:$8 sps:$4 sm:$0xff]  }
   0x6   :  { %v1847_v16 = vld [vmem:[%s3162_s1 + $0x70] ss:$8 sps:$4 sm:$0xff]   ;;  %v32_v17 = vld [vmem:[%s3163_s0] sm:$0xff]  ;;  %v33_v18 = vld [vmem:[%s3163_s0 + $0x8] sm:$0xff] }
   0x7   :  { %200 = vmatpush1.bf16.msra.mxu0 %v1829_v4  ;;  %1816 = vmatpush1.bf16.msra.mxu1 %v1829_v4  ;;  %v52_v19 = vld [vmem:[%s3163_s0 + $0xa0] sm:$0xff]  ;;  %v53_v20 = vld [vmem:[%s3163_s0 + $0xa8] sm:$0xff]  ;;  %v70_v22 = vpack.c.bf16 %v33_v18, %v32_v17  ;;  %v34_v25 = vld [vmem:[%s3163_s0 + $0x10] sm:$0xff] }
   0x8   :  { %201 = vmatprep.subr.bf16.mxu0 %v1830_v5  ;;  %1809 = vmatprep.subr.bf16.mxu1 %v1830_v5  ;;  %v1850_v21 = vld [vmem:[%s3164_s3 + $0x4] ss:$8 sps:$4 sm:$0xff]   ;;  %v80_v23 = vpack.c.bf16 %v53_v20, %v52_v19  ;;  %v1848_v24 = vld [vmem:[%s3164_s3] ss:$8 sps:$4 sm:$0xff]   ;;  %v35_v26 = vld [vmem:[%s3163_s0 + $0x18] sm:$0xff] }
   0x9   :  { %v1853_v27 = vld [vmem:[%s3164_s3 + $0x14] ss:$8 sps:$4 sm:$0xff]   ;;  %v1851_v30 = vld [vmem:[%s3164_s3 + $0x10] ss:$8 sps:$4 sm:$0xff]   ;;  %v1856_v31 = vld [vmem:[%s3164_s3 + $0x24] ss:$8 sps:$4 sm:$0xff]   ;;  %v71_v32 = vpack.c.bf16 %v35_v26, %v34_v25 }
   0xa   :  { %v54_v28 = vld [vmem:[%s3163_s0 + $0xb0] sm:$0xff]  ;;  %v55_v29 = vld [vmem:[%s3163_s0 + $0xb8] sm:$0xff]  ;;  %v1854_v34 = vld [vmem:[%s3164_s3 + $0x20] ss:$8 sps:$4 sm:$0xff]  }
   0xb   :  { %202 = vmatpush1.bf16.msra.mxu0 %v1832_v6  ;;  %1817 = vmatpush1.bf16.msra.mxu1 %v1832_v6  ;;  %v81_v33 = vpack.c.bf16 %v55_v29, %v54_v28  ;;  %v36_v35 = vld [vmem:[%s3163_s0 + $0x20] sm:$0xff]  ;;  %v37_v36 = vld [vmem:[%s3163_s0 + $0x28] sm:$0xff]  ;;  %v1859_v37 = vld [vmem:[%s3164_s3 + $0x34] ss:$8 sps:$4 sm:$0xff]  }
   0xc   :  { %203 = vmatprep.subr.bf16.mxu0 %v1833_v7  ;;  %1810 = vmatprep.subr.bf16.mxu1 %v1833_v7  ;;  %v56_v38 = vld [vmem:[%s3163_s0 + $0xc0] sm:$0xff]  ;;  %v57_v39 = vld [vmem:[%s3163_s0 + $0xc8] sm:$0xff]  ;;  %v1857_v40 = vld [vmem:[%s3164_s3 + $0x30] ss:$8 sps:$4 sm:$0xff]   ;;  %v72_v42 = vpack.c.bf16 %v37_v36, %v36_v35 }
   0xd   :  { %v1862_v41 = vld [vmem:[%s3164_s3 + $0x44] ss:$8 sps:$4 sm:$0xff]   ;;  %v82_v43 = vpack.c.bf16 %v57_v39, %v56_v38  ;;  %v1860_v44 = vld [vmem:[%s3164_s3 + $0x40] ss:$8 sps:$4 sm:$0xff]   ;;  %v1865_v45 = vld [vmem:[%s3164_s3 + $0x54] ss:$8 sps:$4 sm:$0xff]  }
   0xe   :  { %v38_v46 = vld [vmem:[%s3163_s0 + $0x30] sm:$0xff]  ;;  %v39_v47 = vld [vmem:[%s3163_s0 + $0x38] sm:$0xff]  ;;  %v1868_v51 = vld [vmem:[%s3164_s3 + $0x64] ss:$8 sps:$4 sm:$0xff]  }
   0xf   :  { %204 = vmatpush1.bf16.msra.mxu0 %v1835_v8  ;;  %1818 = vmatpush1.bf16.msra.mxu1 %v1835_v8  ;;  %v58_v48 = vld [vmem:[%s3163_s0 + $0xd0] sm:$0xff]  ;;  %v59_v49 = vld [vmem:[%s3163_s0 + $0xd8] sm:$0xff]  ;;  %v73_v52 = vpack.c.bf16 %v39_v47, %v38_v46  ;;  %v1866_v54 = vld [vmem:[%s3164_s3 + $0x60] ss:$8 sps:$4 sm:$0xff]  }
  0x10   :  { %205 = vmatprep.subr.bf16.mxu0 %v1836_v9  ;;  %1811 = vmatprep.subr.bf16.mxu1 %v1836_v9  ;;  %v1863_v50 = vld [vmem:[%s3164_s3 + $0x50] ss:$8 sps:$4 sm:$0xff]   ;;  %v83_v53 = vpack.c.bf16 %v59_v49, %v58_v48  ;;  %v1871_v55 = vld [vmem:[%s3164_s3 + $0x74] ss:$8 sps:$4 sm:$0xff]   ;;  %v40_v56 = vld [vmem:[%s3163_s0 + $0x40] sm:$0xff] }
  0x11   :  { %v41_v57 = vld [vmem:[%s3163_s0 + $0x48] sm:$0xff]  ;;  %v60_v58 = vld [vmem:[%s3163_s0 + $0xe0] sm:$0xff]  ;;  %v1869_v60 = vld [vmem:[%s3164_s3 + $0x70] ss:$8 sps:$4 sm:$0xff]  }
  0x12   :  { %v61_v59 = vld [vmem:[%s3163_s0 + $0xe8] sm:$0xff]  ;;  %v74_v62 = vpack.c.bf16 %v41_v57, %v40_v56  ;;  %v1877_v2 = vld [vmem:[%s3164_s3 + $0x94] ss:$8 sps:$4 sm:$0xff]   ;;  %v1875_v7 = vld [vmem:[%s3164_s3 + $0x90] ss:$8 sps:$4 sm:$0xff]  }
  0x13   :  { %206 = vmatpush1.bf16.msra.mxu0 %v1838_v10  ;;  %1819 = vmatpush1.bf16.msra.mxu1 %v1838_v10  ;;  %v1874_v61 = vld [vmem:[%s3164_s3 + $0x84] ss:$8 sps:$4 sm:$0xff]   ;;  %v84_v63 = vpack.c.bf16 %v61_v59, %v60_v58  ;;  %v1872_v0 = vld [vmem:[%s3164_s3 + $0x80] ss:$8 sps:$4 sm:$0xff]   ;;  %v42_v3 = vld [vmem:[%s3163_s0 + $0x50] sm:$0xff] }
  0x14   :  { %207 = vmatprep.subr.bf16.mxu0 %v1839_v11  ;;  %1812 = vmatprep.subr.bf16.mxu1 %v1839_v11  ;;  %v43_v4 = vld [vmem:[%s3163_s0 + $0x58] sm:$0xff]  ;;  %v62_v5 = vld [vmem:[%s3163_s0 + $0xf0] sm:$0xff]  ;;  %v1880_v8 = vld [vmem:[%s3164_s3 + $0xa4] ss:$8 sps:$4 sm:$0xff]  }
  0x15   :  { %v63_v6 = vld [vmem:[%s3163_s0 + $0xf8] sm:$0xff]  ;;  %v75_v9 = vpack.c.bf16 %v43_v4, %v42_v3  ;;  %v1878_v11 = vld [vmem:[%s3164_s3 + $0xa0] ss:$8 sps:$4 sm:$0xff]   ;;  %v1886_v18 = vld [vmem:[%s3164_s3 + $0xc4] ss:$8 sps:$4 sm:$0xff]  }
  0x16   :  { %v85_v10 = vpack.c.bf16 %v63_v6, %v62_v5  ;;  %v1881_v17 = vld [vmem:[%s3164_s3 + $0xb0] ss:$8 sps:$4 sm:$0xff]   ;;  %v1892_v39 = vld [vmem:[%s3164_s3 + $0xe4] ss:$8 sps:$4 sm:$0xff]   ;;  %v105_v46 = vld [vmem:[%s3165_s2] sm:$0x3] }
  0x17   :  { %208 = vmatpush1.bf16.msra.mxu0 %v1841_v12  ;;  %1820 = vmatpush1.bf16.msra.mxu1 %v1841_v12  ;;  %v1883_v12 = vld [vmem:[%s3164_s3 + $0xb4] ss:$8 sps:$4 sm:$0xff]  }
  0x18   :  { %209 = vmatprep.subr.bf16.mxu0 %v1842_v13  ;;  %1813 = vmatprep.subr.bf16.mxu1 %v1842_v13  ;;  %v44_v13 = vld [vmem:[%s3163_s0 + $0x60] sm:$0xff]  ;;  %v66_v25 = vld [vmem:[%s3163_s0 + $0x110] sm:$0xff]  ;;  %v67_v26 = vld [vmem:[%s3163_s0 + $0x118] sm:$0xff] }
  0x19   :  { %v87_v29 = vpack.c.bf16 %v67_v26, %v66_v25  ;;  %v50_v36 = vld [vmem:[%s3163_s0 + $0x90] sm:$0xff] }
  0x1b   :  { %210 = vmatpush1.bf16.msra.mxu0 %v1844_v14  ;;  %1821 = vmatpush1.bf16.msra.mxu1 %v1844_v14  ;;  %v45_v14 = vld [vmem:[%s3163_s0 + $0x68] sm:$0xff] }
  0x1c   :  { %211 = vmatprep.subr.bf16.mxu0 %v1845_v15  ;;  %1814 = vmatprep.subr.bf16.mxu1 %v1845_v15  ;;  %v64_v15 = vld [vmem:[%s3163_s0 + $0x100] sm:$0xff]  ;;  %v76_v19 = vpack.c.bf16 %v45_v14, %v44_v13 }
  0x1f   :  { %212 = vmatpush1.bf16.msra.mxu0 %v1847_v16  ;;  %1822 = vmatpush1.bf16.msra.mxu1 %v1847_v16  ;;  %v65_v16 = vld [vmem:[%s3163_s0 + $0x108] sm:$0xff] }
  0x20   :  { %891 = vmatprep.subr.bf16.mxu1 %v1850_v21  ;;  %1515 = vmatprep.subr.bf16.mxu0 %v1912_v1  ;;  %v86_v20 = vpack.c.bf16 %v65_v16, %v64_v15  ;;  %v1884_v21 = vld [vmem:[%s3164_s3 + $0xc0] ss:$8 sps:$4 sm:$0xff]  }
  0x22   :  { %230 = vmatmul.mubr.bf16.vlgmr.msra.gmra.mrb[0].mxu0 %v70_v22  ;;  %330 = vmatmul.mubr.bf16.vlgmr.msra.gmra.mrb[0].mxu1 %v80_v23  ;;  %v1889_v22 = vld [vmem:[%s3164_s3 + $0xd4] ss:$8 sps:$4 sm:$0xff]  }
  0x23   :  { %239 = vmatprep.mubr.bf16.mxu0 %v1912_v1  ;;  %339 = vmatprep.mubr.bf16.mxu1 %v1912_v1  ;;  %v46_v23 = vld [vmem:[%s3163_s0 + $0x70] sm:$0xff] }
  0x24   :  { %892 = vmatpush1.bf16.msra.mxu1 %v1848_v24  ;;  %v47_v24 = vld [vmem:[%s3163_s0 + $0x78] sm:$0xff] }
  0x25   :  { %893 = vmatprep.subr.bf16.mxu1 %v1853_v27  ;;  %v1887_v27 = vld [vmem:[%s3164_s3 + $0xd0] ss:$8 sps:$4 sm:$0xff]   ;;  %v77_v28 = vpack.c.bf16 %v47_v24, %v46_v23 }
  0x28   :  { %894 = vmatpush1.bf16.msra.mxu1 %v1851_v30  ;;  %v48_v30 = vld [vmem:[%s3163_s0 + $0x80] sm:$0xff] }
  0x29   :  { %895 = vmatprep.subr.bf16.mxu1 %v1856_v31  ;;  %v49_v31 = vld [vmem:[%s3163_s0 + $0x88] sm:$0xff] }
  0x2a   :  { %240 = vmatmul.mubr.bf16.gmra.mrb[4].mxu0 %v71_v32  ;;  %340 = vmatmul.mubr.bf16.gmra.mrb[4].mxu1 %v81_v33  ;;  %v68_v32 = vld [vmem:[%s3163_s0 + $0x120] sm:$0xff]  ;;  %v69_v33 = vld [vmem:[%s3163_s0 + $0x128] sm:$0xff] }
  0x2b   :  { %249 = vmatprep.mubr.bf16.mxu0 %v1912_v1  ;;  %349 = vmatprep.mubr.bf16.mxu1 %v1912_v1  ;;  %v88_v35 = vpack.c.bf16 %v69_v33, %v68_v32 }
  0x2c   :  { %896 = vmatpush1.bf16.msra.mxu1 %v1854_v34  ;;  %v78_v34 = vpack.c.bf16 %v49_v31, %v48_v30 }
  0x2d   :  { %897 = vmatprep.subr.bf16.mxu1 %v1859_v37  ;;  %v51_v37 = vld [vmem:[%s3163_s0 + $0x98] sm:$0xff] }
  0x2e   :  { %v79_v38 = vpack.c.bf16 %v51_v37, %v50_v36 }
  0x30   :  { %898 = vmatpush1.bf16.msra.mxu1 %v1857_v40  ;;  %v1890_v40 = vld [vmem:[%s3164_s3 + $0xe0] ss:$8 sps:$4 sm:$0xff]  }
  0x31   :  { %899 = vmatprep.subr.bf16.mxu1 %v1862_v41  ;;  %v1895_v41 = vld [vmem:[%s3164_s3 + $0xf4] ss:$8 sps:$4 sm:$0xff]  }
  0x32   :  { %250 = vmatmul.mubr.bf16.gmra.mrb[8].mxu0 %v72_v42  ;;  %350 = vmatmul.mubr.bf16.gmra.mrb[8].mxu1 %v82_v43  ;;  %v1893_v42 = vld [vmem:[%s3164_s3 + $0xf0] ss:$8 sps:$4 sm:$0xff]   ;;  %v107_v43 = vlaneseq }
  0x33   :  { %259 = vmatprep.mubr.bf16.mxu0 %v1912_v1  ;;  %359 = vmatprep.mubr.bf16.mxu1 %v1912_v1 }
  0x34   :  { %900 = vmatpush1.bf16.msra.mxu1 %v1860_v44  ;;  %v2236_v44 = vshrl.u32 %v107_v43, 7 }
  0x35   :  { %901 = vmatprep.subr.bf16.mxu1 %v1865_v45 }
  0x36   :  { %v3172_v45 = vsub.s32 0, %v2236_v44  ;;  %v3171_v47 = vsub.s32 1, %v2236_v44 }
  0x38   :  { %902 = vmatpush1.bf16.msra.mxu1 %v1863_v50  ;;  %v2245_v48 = vrot.slane %v105_v46, %v3172_v45  ;;  %v2249_v49 = vrot.slane %v105_v46, %v3171_v47 }
  0x39   :  { %903 = vmatprep.subr.bf16.mxu1 %v1868_v51  ;;  %v2254_v51 = vstv %s3166_s7 }
  0x3a   :  { %260 = vmatmul.mubr.bf16.gmra.mrb[12].mxu0 %v73_v52  ;;  %360 = vmatmul.mubr.bf16.gmra.mrb[12].mxu1 %v83_v53 }
  0x3b   :  { %269 = vmatprep.mubr.bf16.mxu0 %v1912_v1  ;;  %369 = vmatprep.mubr.bf16.mxu1 %v1912_v1 }
  0x3c   :  { %904 = vmatpush1.bf16.msra.mxu1 %v1866_v54 }
  0x3d   :  { %905 = vmatprep.subr.bf16.mxu1 %v1871_v55 }
  0x40   :  { %906 = vmatpush1.bf16.msra.mxu1 %v1869_v60 }
  0x41   :  { %907 = vmatprep.subr.bf16.mxu1 %v1874_v61 }
  0x42   :  { %270 = vmatmul.mubr.bf16.gmra.mrb[16].mxu0 %v74_v62  ;;  %370 = vmatmul.mubr.bf16.gmra.mrb[16].mxu1 %v84_v63 }
  0x43   :  { %279 = vmatprep.mubr.bf16.mxu0 %v1912_v1  ;;  %379 = vmatprep.mubr.bf16.mxu1 %v1912_v1 }
  0x44   :  { %908 = vmatpush1.bf16.msra.mxu1 %v1872_v0 }
  0x45   :  { %909 = vmatprep.subr.bf16.mxu1 %v1877_v2 }
  0x48   :  { %910 = vmatpush1.bf16.msra.mxu1 %v1875_v7 }
  0x49   :  { %911 = vmatprep.subr.bf16.mxu1 %v1880_v8 }
  0x4a   :  { %280 = vmatmul.mubr.bf16.gmra.mrb[20].mxu0 %v75_v9  ;;  %380 = vmatmul.mubr.bf16.gmra.mrb[20].mxu1 %v85_v10 }
  0x4b   :  { %289 = vmatprep.mubr.bf16.mxu0 %v1912_v1  ;;  %389 = vmatprep.mubr.bf16.mxu1 %v1912_v1 }
  0x4c   :  { %912 = vmatpush1.bf16.msra.mxu1 %v1878_v11 }
  0x4d   :  { %913 = vmatprep.subr.bf16.mxu1 %v1883_v12 }
  0x50   :  { %914 = vmatpush1.bf16.msra.mxu1 %v1881_v17 }
  0x51   :  { %915 = vmatprep.subr.bf16.mxu1 %v1886_v18 }
  0x52   :  { %290 = vmatmul.mubr.bf16.gmra.mrb[24].mxu0 %v76_v19  ;;  %390 = vmatmul.mubr.bf16.gmra.mrb[24].mxu1 %v86_v20 }
  0x53   :  { %299 = vmatprep.mubr.bf16.mxu0 %v1912_v1  ;;  %399 = vmatprep.mubr.bf16.mxu1 %v1912_v1 }
  0x54   :  { %916 = vmatpush1.bf16.msra.mxu1 %v1884_v21 }
  0x55   :  { %917 = vmatprep.subr.bf16.mxu1 %v1889_v22 }
  0x58   :  { %918 = vmatpush1.bf16.msra.mxu1 %v1887_v27 }
  0x59   :  { %919 = vmatprep.subr.bf16.mxu1 %v1892_v39 }
  0x5a   :  { %300 = vmatmul.mubr.bf16.gmra.mrb[28].mxu0 %v77_v28  ;;  %400 = vmatmul.mubr.bf16.gmra.mrb[28].mxu1 %v87_v29 }
  0x5b   :  { %309 = vmatprep.mubr.bf16.mxu0 %v1912_v1  ;;  %409 = vmatprep.mubr.bf16.mxu1 %v1912_v1 }
  0x5c   :  { %920 = vmatpush1.bf16.msra.mxu1 %v1890_v40 }
  0x5d   :  { %921 = vmatprep.subr.bf16.mxu1 %v1895_v41 }
  0x60   :  { %922 = vmatpush1.bf16.msra.mxu1 %v1893_v42 }
  0x62   :  { %310 = vmatmul.mubr.bf16.gmra.mrb[32].mxu0 %v78_v34  ;;  %410 = vmatmul.mubr.bf16.gmra.mrb[32].mxu1 %v88_v35 }
  0x63   :  { %319 = vmatprep.mubr.bf16.mxu0 %v1912_v1 }
  0x6a   :  { %320 = vmatmul.mubr.bf16.gmra.mrb[36].mxu0 %v79_v38 }
  0xf5   :  { %v231_v50 = vpop.f32.mrb[0].mxu0  ;;  %v331_v52 = vpop.f32.mrb[0].mxu1 }
  0xf6   :  { %v232_v53 = vadd.f32 %v231_v50, %v2245_v48  ;;  %v233_v54 = vpop.f32.mrb[1].mxu0  ;;  %v333_v55 = vpop.f32.mrb[1].mxu1  ;;  %v332_v5 = vadd.f32 %v331_v52, %v2245_v48 }
  0xf7   :  { %v234_v56 = vadd.f32 %v233_v54, %v2249_v49  ;;  %v235_v57 = vpop.f32.mrb[2].mxu0  ;;  %v335_v58 = vpop.f32.mrb[2].mxu1  ;;  %v334_v3 = vadd.f32 %v333_v55, %v2249_v49 }
  0xf8   :  { %v497_v59 = vmul.f32 %v2254_v51, %v232_v53  ;;  %v236_v60 = vadd.f32 %v235_v57, %v2245_v48  ;;  %v237_v61 = vpop.f32.mrb[3].mxu0  ;;  %v337_v62 = vpop.f32.mrb[3].mxu1  ;;  %vm420_vm0 = vcmp.gt.f32.partialorder %v232_v53, 0.0  ;;  %vm460_vm4 = vcmp.gt.f32.partialorder %v332_v5, 0.0 }
  0xf9   :  { %v498_v63 = vmul.f32 %v2254_v51, %v234_v56  ;;  %v238_v0 = vadd.f32 %v237_v61, %v2249_v49  ;;  %vm421_vm1 = vcmp.gt.f32.partialorder %v234_v56, 0.0  ;;  %v338_v8 = vadd.f32 %v337_v62, %v2249_v49 }
  0xfa   :  { %vm422_vm2 = vcmp.gt.f32.partialorder %v236_v60, 0.0  ;;  %v499_v2 = vmul.f32 %v2254_v51, %v236_v60  ;;  %v573_v6 = vsel %vm420_vm0, %v232_v53, %v497_v59  ;;  %v538_v17 = vmul.f32 %v2254_v51, %v334_v3 }
  0xfb   :  { %vm423_vm3 = vcmp.gt.f32.partialorder %v238_v0, 0.0  ;;  %v500_v4 = vmul.f32 %v2254_v51, %v238_v0  ;;  %v574_v11 = vsel %vm421_vm1, %v234_v56, %v498_v63  ;;  %vm461_vm5 = vcmp.gt.f32.partialorder %v334_v3, 0.0 }
  0xfc   :  { %v575_v7 = vsel %vm422_vm2, %v236_v60, %v499_v2  ;;  %v336_v21 = vadd.f32 %v335_v58, %v2245_v48  ;;  %v537_v26 = vmul.f32 %v2254_v51, %v332_v5  ;;  %v540_v27 = vmul.f32 %v2254_v51, %v338_v8 }
  0xfd   :  { %v649_v9 = vpack.c.bf16 %v575_v7, %v573_v6  ;;  %v241_v10 = vpop.f32.mrb[4].mxu0  ;;  %v576_v12 = vsel %vm423_vm3, %v238_v0, %v500_v4  ;;  %v2267_v13 = vpop.f32.mrb[4].mxu1  ;;  %vm463_vm9 = vcmp.gt.f32.partialorder %v338_v8, 0.0  ;;  %v2281_v32 = vsel %vm461_vm5, %v334_v3, %v538_v17 }
  0xfe   :  { %v242_v14 = vadd.f32 %v241_v10, %v2245_v48  ;;  %v243_v15 = vpop.f32.mrb[5].mxu0  ;;  %v650_v16 = vpack.c.bf16 %v576_v12, %v574_v11  ;;  %v343_v18 = vpop.f32.mrb[5].mxu1  ;;  %vm462_vm11 = vcmp.gt.f32.partialorder %v336_v21, 0.0  ;;  %v539_v38 = vmul.f32 %v2254_v51, %v336_v21  ;;  %v1896_v10 = vld [vmem:[%s3167_s5] sm:$0xff]  }
  0xff   :  { %v244_v19 = vadd.f32 %v243_v15, %v2249_v49  ;;  %v245_v20 = vpop.f32.mrb[6].mxu0  ;;  %v345_v22 = vpop.f32.mrb[6].mxu1  ;;  %v344_v34 = vadd.f32 %v343_v18, %v2249_v49  ;;  %v2287_v43 = vsel %vm463_vm9, %v338_v8, %v540_v27  ;;  %v2294_v58 = vsel %vm460_vm4, %v332_v5, %v537_v26  ;;  %1516 = vmatpush1.bf16.msra.mxu0 %v1896_v10  ;;  %v1899_v10 = vld [vmem:[%s3167_s5 + $0x18] sm:$0xff]  }
 0x100   :  { %v501_v23 = vmul.f32 %v2254_v51, %v242_v14  ;;  %v246_v24 = vadd.f32 %v245_v20, %v2245_v48  ;;  %v247_v25 = vpop.f32.mrb[7].mxu0  ;;  %923 = vmatprep.mubr.bf16.mxu1 %v650_v16  ;;  %v347_v28 = vpop.f32.mrb[7].mxu1  ;;  %vm424_vm6 = vcmp.gt.f32.partialorder %v242_v14, 0.0  ;;  %v2300_v0 = vsel %vm462_vm11, %v336_v21, %v539_v38  ;;  %1517 = vmatprep.subr.bf16.mxu0 %v1912_v1 }
 0x101   :  { %vm425_vm7 = vcmp.gt.f32.partialorder %v244_v19, 0.0  ;;  %v502_v29 = vmul.f32 %v2254_v51, %v244_v19  ;;  %v248_v30 = vadd.f32 %v247_v25, %v2249_v49  ;;  %924 = vmatmul.mubr.bf16.vlgmr.msra.gmra.mrb[36].mxu1 %v649_v9  ;;  %v348_v42 = vadd.f32 %v347_v28, %v2249_v49 }
 0x102   :  { %vm426_vm8 = vcmp.gt.f32.partialorder %v246_v24, 0.0  ;;  %v503_v31 = vmul.f32 %v2254_v51, %v246_v24  ;;  %v577_v36 = vsel %vm424_vm6, %v242_v14, %v501_v23  ;;  %vm465_vm12 = vcmp.gt.f32.partialorder %v344_v34, 0.0 }
 0x103   :  { %vm427_vm10 = vcmp.gt.f32.partialorder %v248_v30, 0.0  ;;  %v504_v33 = vmul.f32 %v2254_v51, %v248_v30  ;;  %v578_v35 = vsel %vm425_vm7, %v244_v19, %v502_v29  ;;  %v542_v63 = vmul.f32 %v2254_v51, %v344_v34 }
 0x104   :  { %v579_v37 = vsel %vm426_vm8, %v246_v24, %v503_v31  ;;  %vm467_vm14 = vcmp.gt.f32.partialorder %v348_v42, 0.0  ;;  %v544_v6 = vmul.f32 %v2254_v51, %v348_v42  ;;  %v342_v8 = vadd.f32 %v2267_v13, %v2245_v48 }
 0x105   :  { %v251_v39 = vpop.f32.mrb[8].mxu0  ;;  %v580_v40 = vsel %vm427_vm10, %v248_v30, %v504_v33  ;;  %v651_v41 = vpack.c.bf16 %v579_v37, %v577_v36  ;;  %v351_v46 = vpop.f32.mrb[8].mxu1  ;;  %v2310_v9 = vadd.f32 %v345_v22, %v2245_v48  ;;  %v2325_v24 = vsel %vm465_vm12, %v344_v34, %v542_v63 }
 0x106   :  { %v252_v50 = vadd.f32 %v251_v39, %v2245_v48  ;;  %v253_v52 = vpop.f32.mrb[9].mxu0  ;;  %v652_v53 = vpack.c.bf16 %v580_v40, %v578_v35  ;;  %v353_v54 = vpop.f32.mrb[9].mxu1  ;;  %v2321_v13 = vadd.f32 %v351_v46, %v2245_v48  ;;  %v2328_v25 = vsel %vm467_vm14, %v348_v42, %v544_v6  ;;  %v1897_v40 = vld [vmem:[%s3167_s5 + $0x8] sm:$0xff]  }
 0x107   :  { %v254_v55 = vadd.f32 %v253_v52, %v2249_v49  ;;  %v255_v56 = vpop.f32.mrb[10].mxu0  ;;  %v355_v59 = vpop.f32.mrb[10].mxu1  ;;  %v2316_v14 = vadd.f32 %v353_v54, %v2249_v49  ;;  %vm464_vm2 = vcmp.gt.f32.partialorder %v342_v8, 0.0  ;;  %v541_v29 = vmul.f32 %v2254_v51, %v342_v8  ;;  %1518 = vmatpush1.bf16.msra.mxu0 %v1897_v40 }
 0x108   :  { %v505_v60 = vmul.f32 %v2254_v51, %v252_v50  ;;  %v256_v61 = vadd.f32 %v255_v56, %v2245_v48  ;;  %v257_v62 = vpop.f32.mrb[11].mxu0  ;;  %933 = vmatprep.mubr.bf16.mxu1 %v652_v53  ;;  %v357_v2 = vpop.f32.mrb[11].mxu1  ;;  %vm428_vm13 = vcmp.gt.f32.partialorder %v252_v50, 0.0  ;;  %vm466_vm3 = vcmp.gt.f32.partialorder %v2310_v9, 0.0  ;;  %v1898_v53 = vld [vmem:[%s3167_s5 + $0x10] sm:$0xff]   ;;  %1519 = vmatprep.subr.bf16.mxu0 %v1912_v1 }
 0x109   :  { %v506_v3 = vmul.f32 %v2254_v51, %v254_v55  ;;  %v258_v4 = vadd.f32 %v257_v62, %v2249_v49  ;;  %934 = vmatmul.mubr.bf16.gmra.mrb[40].mxu1 %v651_v41  ;;  %vm429_vm15 = vcmp.gt.f32.partialorder %v254_v55, 0.0  ;;  %vm469_vm4 = vcmp.gt.f32.partialorder %v2316_v14, 0.0 }
 0x10a   :  { %vm430_vm0 = vcmp.gt.f32.partialorder %v256_v61, 0.0  ;;  %v507_v5 = vmul.f32 %v2254_v51, %v256_v61  ;;  %v581_v11 = vsel %vm428_vm13, %v252_v50, %v505_v60  ;;  %v2340_v35 = vadd.f32 %v355_v59, %v2245_v48 }
 0x10b   :  { %vm431_vm1 = vcmp.gt.f32.partialorder %v258_v4, 0.0  ;;  %v508_v7 = vmul.f32 %v2254_v51, %v258_v4  ;;  %v582_v17 = vsel %vm429_vm15, %v254_v55, %v506_v3  ;;  %v543_v42 = vmul.f32 %v2254_v51, %v2310_v9  ;;  %1520 = vmatpush1.bf16.msra.mxu0 %v1898_v53 }
 0x10c   :  { %v583_v12 = vsel %vm430_vm0, %v256_v61, %v507_v5  ;;  %vm468_vm8 = vcmp.gt.f32.partialorder %v2321_v13, 0.0  ;;  %v2358_v50 = vmul.f32 %v2254_v51, %v2321_v13  ;;  %v358_v52 = vadd.f32 %v357_v2, %v2249_v49  ;;  %1521 = vmatprep.subr.bf16.mxu0 %v1912_v1 }
 0x10d   :  { %v261_v16 = vpop.f32.mrb[12].mxu0  ;;  %v584_v18 = vsel %vm431_vm1, %v258_v4, %v508_v7  ;;  %v653_v19 = vpack.c.bf16 %v583_v12, %v581_v11  ;;  %v361_v20 = vpop.f32.mrb[12].mxu1  ;;  %v546_v56 = vmul.f32 %v2254_v51, %v2316_v14  ;;  %v2368_v59 = vsel %vm464_vm2, %v342_v8, %v541_v29 }
 0x10e   :  { %v262_v21 = vadd.f32 %v261_v16, %v2245_v48  ;;  %v263_v22 = vpop.f32.mrb[13].mxu0  ;;  %v654_v23 = vpack.c.bf16 %v584_v18, %v582_v17  ;;  %v363_v26 = vpop.f32.mrb[13].mxu1  ;;  %vm470_vm10 = vcmp.gt.f32.partialorder %v2340_v35, 0.0  ;;  %v2375_v6 = vadd.f32 %v361_v20, %v2245_v48 }
 0x10f   :  { %v264_v27 = vadd.f32 %v263_v22, %v2249_v49  ;;  %v265_v28 = vpop.f32.mrb[14].mxu0  ;;  %v2334_v30 = vpop.f32.mrb[14].mxu1  ;;  %v2380_v7 = vsel %vm466_vm3, %v2310_v9, %v543_v42  ;;  %v547_v16 = vmul.f32 %v2254_v51, %v2340_v35  ;;  %v548_v17 = vmul.f32 %v2254_v51, %v358_v52  ;;  %1522 = vmatpush1.bf16.msra.mxu0 %v1899_v10  ;;  %v1901_v10 = vld [vmem:[%s3167_s5 + $0x28] sm:$0xff]  }
 0x110   :  { %v509_v31 = vmul.f32 %v2254_v51, %v262_v21  ;;  %v266_v33 = vadd.f32 %v265_v28, %v2245_v48  ;;  %v267_v34 = vpop.f32.mrb[15].mxu0  ;;  %943 = vmatprep.mubr.bf16.mxu1 %v654_v23  ;;  %v2342_v36 = vpop.f32.mrb[15].mxu1  ;;  %vm432_vm5 = vcmp.gt.f32.partialorder %v262_v21, 0.0  ;;  %vm471_vm11 = vcmp.gt.f32.partialorder %v358_v52, 0.0  ;;  %1523 = vmatprep.subr.bf16.mxu0 %v1912_v1 }
 0x111   :  { %v510_v37 = vmul.f32 %v2254_v51, %v264_v27  ;;  %v268_v38 = vadd.f32 %v267_v34, %v2249_v49  ;;  %944 = vmatmul.mubr.bf16.gmra.mrb[44].mxu1 %v653_v19  ;;  %vm433_vm6 = vcmp.gt.f32.partialorder %v264_v27, 0.0  ;;  %v2398_v22 = vadd.f32 %v363_v26, %v2249_v49 }
 0x112   :  { %vm434_vm7 = vcmp.gt.f32.partialorder %v266_v33, 0.0  ;;  %v511_v41 = vmul.f32 %v2254_v51, %v266_v33  ;;  %v585_v54 = vsel %vm432_vm5, %v262_v21, %v509_v31  ;;  %v2408_v31 = vmul.f32 %v2254_v51, %v2375_v6 }
 0x113   :  { %vm435_vm9 = vcmp.gt.f32.partialorder %v268_v38, 0.0  ;;  %v512_v46 = vmul.f32 %v2254_v51, %v268_v38  ;;  %v586_v61 = vsel %vm433_vm6, %v264_v27, %v510_v37  ;;  %v2413_v26 = vsel %vm469_vm4, %v2316_v14, %v546_v56 }
 0x114   :  { %v587_v55 = vsel %vm434_vm7, %v266_v33, %v511_v41  ;;  %v2418_v34 = vadd.f32 %v2334_v30, %v2245_v48  ;;  %v368_v37 = vadd.f32 %v2342_v36, %v2249_v49  ;;  %v2427_v42 = vsel %vm471_vm11, %v358_v52, %v548_v17 }
 0x115   :  { %v271_v60 = vpop.f32.mrb[16].mxu0  ;;  %v588_v62 = vsel %vm435_vm9, %v268_v38, %v512_v46  ;;  %v655_v63 = vpack.c.bf16 %v587_v55, %v585_v54  ;;  %v371_v2 = vpop.f32.mrb[16].mxu1  ;;  %v1900_v38 = vld [vmem:[%s3167_s5 + $0x20] sm:$0xff]   ;;  %vm472_vm0 = vcmp.gt.f32.partialorder %v2375_v6, 0.0  ;;  %v2437_v54 = vsel %vm468_vm8, %v2321_v13, %v2358_v50 }
 0x116   :  { %v272_v3 = vadd.f32 %v271_v60, %v2245_v48  ;;  %v273_v4 = vpop.f32.mrb[17].mxu0  ;;  %v656_v5 = vpack.c.bf16 %v588_v62, %v586_v61  ;;  %v2382_v8 = vpop.f32.mrb[17].mxu1  ;;  %vm473_vm1 = vcmp.gt.f32.partialorder %v2398_v22, 0.0  ;;  %v550_v61 = vmul.f32 %v2254_v51, %v2398_v22  ;;  %1524 = vmatpush1.bf16.msra.mxu0 %v1900_v38 }
 0x117   :  { %v274_v11 = vadd.f32 %v273_v4, %v2249_v49  ;;  %v275_v12 = vpop.f32.mrb[18].mxu0  ;;  %v2393_v19 = vpop.f32.mrb[18].mxu1  ;;  %v552_v4 = vmul.f32 %v2254_v51, %v368_v37  ;;  %v2450_v13 = vadd.f32 %v371_v2, %v2245_v48  ;;  %v2455_v50 = vsel %vm470_vm10, %v2340_v35, %v547_v16  ;;  %1525 = vmatprep.subr.bf16.mxu0 %v1912_v1 }
 0x118   :  { %v513_v9 = vmul.f32 %v2254_v51, %v272_v3  ;;  %v276_v20 = vadd.f32 %v275_v12, %v2245_v48  ;;  %v277_v21 = vpop.f32.mrb[19].mxu0  ;;  %953 = vmatprep.mubr.bf16.mxu1 %v656_v5  ;;  %v2400_v23 = vpop.f32.mrb[19].mxu1  ;;  %vm436_vm12 = vcmp.gt.f32.partialorder %v272_v3, 0.0  ;;  %vm474_vm2 = vcmp.gt.f32.partialorder %v2418_v34, 0.0 }
 0x119   :  { %vm437_vm13 = vcmp.gt.f32.partialorder %v274_v11, 0.0  ;;  %v514_v27 = vmul.f32 %v2254_v51, %v274_v11  ;;  %v278_v28 = vadd.f32 %v277_v21, %v2249_v49  ;;  %954 = vmatmul.mubr.bf16.gmra.mrb[48].mxu1 %v655_v63  ;;  %v551_v21 = vmul.f32 %v2254_v51, %v2418_v34 }
 0x11a   :  { %vm438_vm14 = vcmp.gt.f32.partialorder %v276_v20, 0.0  ;;  %v515_v29 = vmul.f32 %v2254_v51, %v276_v20  ;;  %v589_v41 = vsel %vm436_vm12, %v272_v3, %v513_v9  ;;  %vm475_vm6 = vcmp.gt.f32.partialorder %v368_v37, 0.0  ;;  %1526 = vmatpush1.bf16.msra.mxu0 %v1901_v10 }
 0x11b   :  { %vm439_vm15 = vcmp.gt.f32.partialorder %v278_v28, 0.0  ;;  %v516_v33 = vmul.f32 %v2254_v51, %v278_v28  ;;  %v590_v40 = vsel %vm437_vm13, %v274_v11, %v514_v27  ;;  %1527 = vmatprep.subr.bf16.mxu0 %v1912_v1  ;;  %vm476_vm11 = vcmp.gt.f32.partialorder %v2450_v13, 0.0 }
 0x11c   :  { %v591_v14 = vsel %vm438_vm14, %v276_v20, %v515_v29  ;;  %v2482_v29 = vadd.f32 %v2400_v23, %v2249_v49  ;;  %v2496_v23 = vsel %vm473_vm1, %v2398_v22, %v550_v61 }
 0x11d   :  { %v281_v46 = vpop.f32.mrb[20].mxu0  ;;  %v592_v30 = vsel %vm439_vm15, %v278_v28, %v516_v33  ;;  %v657_v53 = vpack.c.bf16 %v591_v14, %v589_v41  ;;  %v2439_v55 = vpop.f32.mrb[20].mxu1  ;;  %v2478_v28 = vadd.f32 %v2382_v8, %v2249_v49  ;;  %v1902_v33 = vld [vmem:[%s3167_s5 + $0x30] sm:$0xff]   ;;  %v2490_v14 = vmul.f32 %v2254_v51, %v2450_v13 }
 0x11e   :  { %v282_v52 = vadd.f32 %v281_v46, %v2245_v48  ;;  %v283_v56 = vpop.f32.mrb[21].mxu0  ;;  %v658_v60 = vpack.c.bf16 %v592_v30, %v590_v40  ;;  %v2445_v62 = vpop.f32.mrb[21].mxu1  ;;  %1528 = vmatpush1.bf16.msra.mxu0 %v1902_v33  ;;  %vm479_vm14 = vcmp.gt.f32.partialorder %v2482_v29, 0.0 }
 0x11f   :  { %v284_v63 = vadd.f32 %v283_v56, %v2249_v49  ;;  %v285_v3 = vpop.f32.mrb[22].mxu0  ;;  %v2457_v5 = vpop.f32.mrb[22].mxu1  ;;  %vm477_vm8 = vcmp.gt.f32.partialorder %v2478_v28, 0.0  ;;  %1529 = vmatprep.subr.bf16.mxu0 %v1912_v1 }
 0x120   :  { %v517_v11 = vmul.f32 %v2254_v51, %v282_v52  ;;  %v286_v12 = vadd.f32 %v285_v3, %v2245_v48  ;;  %v287_v17 = vpop.f32.mrb[23].mxu0  ;;  %963 = vmatprep.mubr.bf16.mxu1 %v658_v60  ;;  %v2467_v35 = vpop.f32.mrb[23].mxu1  ;;  %vm440_vm3 = vcmp.gt.f32.partialorder %v282_v52, 0.0  ;;  %v2506_v3 = vadd.f32 %v2393_v19, %v2245_v48  ;;  %v1903_v19 = vld [vmem:[%s3167_s5 + $0x38] sm:$0xff]  }
 0x121   :  { %vm441_vm4 = vcmp.gt.f32.partialorder %v284_v63, 0.0  ;;  %v518_v16 = vmul.f32 %v2254_v51, %v284_v63  ;;  %v288_v9 = vadd.f32 %v287_v17, %v2249_v49  ;;  %964 = vmatmul.mubr.bf16.gmra.mrb[52].mxu1 %v657_v53  ;;  %v2499_v53 = vsel %vm475_vm6, %v368_v37, %v552_v4 }
 0x122   :  { %vm442_vm5 = vcmp.gt.f32.partialorder %v286_v12, 0.0  ;;  %v519_v20 = vmul.f32 %v2254_v51, %v286_v12  ;;  %v593_v40 = vsel %vm440_vm3, %v282_v52, %v517_v11  ;;  %v554_v37 = vmul.f32 %v2254_v51, %v2478_v28  ;;  %1530 = vmatpush1.bf16.msra.mxu0 %v1903_v19 }
 0x123   :  { %vm443_vm7 = vcmp.gt.f32.partialorder %v288_v9, 0.0  ;;  %v520_v27 = vmul.f32 %v2254_v51, %v288_v9  ;;  %v594_v38 = vsel %vm441_vm4, %v284_v63, %v518_v16  ;;  %v556_v4 = vmul.f32 %v2254_v51, %v2482_v29  ;;  %1531 = vmatprep.subr.bf16.mxu0 %v1912_v1 }
 0x124   :  { %v595_v41 = vsel %vm442_vm5, %v286_v12, %v519_v20  ;;  %v2529_v20 = vsel %vm472_vm0, %v2375_v6, %v2408_v31  ;;  %vm478_vm13 = vcmp.gt.f32.partialorder %v2506_v3, 0.0  ;;  %v2547_v31 = vadd.f32 %v2439_v55, %v2245_v48 }
 0x125   :  { %v291_v8 = vpop.f32.mrb[24].mxu0  ;;  %v596_v46 = vsel %vm443_vm7, %v288_v9, %v520_v27  ;;  %v659_v30 = vpack.c.bf16 %v595_v41, %v593_v40  ;;  %v2501_v56 = vpop.f32.mrb[24].mxu1  ;;  %v2540_v40 = vsel %vm474_vm2, %v2418_v34, %v551_v21  ;;  %v2553_v34 = vadd.f32 %v2445_v62, %v2249_v49  ;;  %v1904_v21 = vld [vmem:[%s3167_s5 + $0x40] sm:$0xff]  }
 0x126   :  { %v292_v52 = vadd.f32 %v291_v8, %v2245_v48  ;;  %v293_v60 = vpop.f32.mrb[25].mxu0  ;;  %v660_v63 = vpack.c.bf16 %v596_v46, %v594_v38  ;;  %v2510_v11 = vpop.f32.mrb[25].mxu1  ;;  %1532 = vmatpush1.bf16.msra.mxu0 %v1904_v21  ;;  %vm480_vm3 = vcmp.gt.f32.partialorder %v2547_v31, 0.0  ;;  %v2622_v45 = vadd.f32 %v2501_v56, %v2245_v48 }
 0x127   :  { %v294_v22 = vadd.f32 %v293_v60, %v2249_v49  ;;  %v295_v61 = vpop.f32.mrb[26].mxu0  ;;  %v2518_v12 = vpop.f32.mrb[26].mxu1  ;;  %v2563_v60 = vadd.f32 %v2457_v5, %v2245_v48  ;;  %vm481_vm0 = vcmp.gt.f32.partialorder %v2553_v34, 0.0  ;;  %1533 = vmatprep.subr.bf16.mxu0 %v1912_v1  ;;  %v2637_v56 = vsel %vm476_vm11, %v2450_v13, %v2490_v14 }
 0x128   :  { %vm444_vm9 = vcmp.gt.f32.partialorder %v292_v52, 0.0  ;;  %v521_v17 = vmul.f32 %v2254_v51, %v292_v52  ;;  %v296_v16 = vadd.f32 %v295_v61, %v2245_v48  ;;  %v297_v9 = vpop.f32.mrb[27].mxu0  ;;  %973 = vmatprep.mubr.bf16.mxu1 %v660_v63  ;;  %v2531_v27 = vpop.f32.mrb[27].mxu1  ;;  %v2569_v61 = vsel %vm477_vm8, %v2478_v28, %v554_v37 }
 0x129   :  { %vm445_vm10 = vcmp.gt.f32.partialorder %v294_v22, 0.0  ;;  %v522_v33 = vmul.f32 %v2254_v51, %v294_v22  ;;  %v298_v38 = vadd.f32 %v297_v9, %v2249_v49  ;;  %974 = vmatmul.mubr.bf16.gmra.mrb[56].mxu1 %v659_v30  ;;  %v555_v9 = vmul.f32 %v2254_v51, %v2506_v3 }
 0x12a   :  { %vm446_vm12 = vcmp.gt.f32.partialorder %v296_v16, 0.0  ;;  %v523_v6 = vmul.f32 %v2254_v51, %v296_v16  ;;  %v597_v8 = vsel %vm444_vm9, %v292_v52, %v521_v17  ;;  %vm482_vm5 = vcmp.gt.f32.partialorder %v2563_v60, 0.0 }
 0x12b   :  { %vm447_vm15 = vcmp.gt.f32.partialorder %v298_v38, 0.0  ;;  %v524_v41 = vmul.f32 %v2254_v51, %v298_v38  ;;  %v598_v46 = vsel %vm445_vm10, %v294_v22, %v522_v33  ;;  %v2574_v22 = vsel %vm479_vm14, %v2482_v29, %v556_v4 }
 0x12c   :  { %v599_v30 = vsel %vm446_vm12, %v296_v16, %v523_v6  ;;  %v2583_v33 = vadd.f32 %v2467_v35, %v2249_v49  ;;  %v2590_v29 = vmul.f32 %v2254_v51, %v2547_v31  ;;  %v558_v4 = vmul.f32 %v2254_v51, %v2553_v34  ;;  %v1905_v35 = vld [vmem:[%s3167_s5 + $0x48] sm:$0xff]  }
 0x12d   :  { %v301_v52 = vpop.f32.mrb[28].mxu0  ;;  %v600_v62 = vsel %vm447_vm15, %v298_v38, %v524_v41  ;;  %v661_v63 = vpack.c.bf16 %v599_v30, %v597_v8  ;;  %v2576_v19 = vpop.f32.mrb[28].mxu1  ;;  %1534 = vmatpush1.bf16.msra.mxu0 %v1905_v35  ;;  %v2643_v36 = vsel %vm478_vm13, %v2506_v3, %v555_v9  ;;  %vm484_vm14 = vcmp.gt.f32.partialorder %v2622_v45, 0.0 }
 0x12e   :  { %v302_v5 = vadd.f32 %v301_v52, %v2245_v48  ;;  %v303_v17 = vpop.f32.mrb[29].mxu0  ;;  %v662_v16 = vpack.c.bf16 %v600_v62, %v598_v46  ;;  %v2585_v28 = vpop.f32.mrb[29].mxu1  ;;  %v2606_v52 = vmul.f32 %v2254_v51, %v2563_v60  ;;  %vm483_vm6 = vcmp.gt.f32.partialorder %v2583_v33, 0.0  ;;  %1535 = vmatprep.subr.bf16.mxu0 %v1912_v1 }
 0x12f   :  { %v304_v37 = vadd.f32 %v303_v17, %v2249_v49  ;;  %v305_v38 = vpop.f32.mrb[30].mxu0  ;;  %v2596_v41 = vpop.f32.mrb[30].mxu1 }
 0x130   :  { %v525_v8 = vmul.f32 %v2254_v51, %v302_v5  ;;  %v306_v46 = vadd.f32 %v305_v38, %v2245_v48  ;;  %v307_v30 = vpop.f32.mrb[31].mxu0  ;;  %983 = vmatprep.mubr.bf16.mxu1 %v662_v16  ;;  %v2608_v62 = vpop.f32.mrb[31].mxu1  ;;  %vm448_vm1 = vcmp.gt.f32.partialorder %v302_v5, 0.0  ;;  %v560_v38 = vmul.f32 %v2254_v51, %v2583_v33 }
 0x131   :  { %vm449_vm2 = vcmp.gt.f32.partialorder %v304_v37, 0.0  ;;  %v526_v21 = vmul.f32 %v2254_v51, %v304_v37  ;;  %v308_v17 = vadd.f32 %v307_v30, %v2249_v49  ;;  %984 = vmatmul.mubr.bf16.gmra.mrb[60].mxu1 %v661_v63  ;;  %v2626_v63 = vadd.f32 %v2510_v11, %v2249_v49  ;;  %v1906_v30 = vld [vmem:[%s3167_s5 + $0x50] sm:$0xff]  }
 0x132   :  { %vm450_vm4 = vcmp.gt.f32.partialorder %v306_v46, 0.0  ;;  %v527_v16 = vmul.f32 %v2254_v51, %v306_v46  ;;  %v601_v55 = vsel %vm448_vm1, %v302_v5, %v525_v8  ;;  %v2647_v5 = vadd.f32 %v2518_v12, %v2245_v48  ;;  %1536 = vmatpush1.bf16.msra.mxu0 %v1906_v30 }
 0x133   :  { %vm451_vm7 = vcmp.gt.f32.partialorder %v308_v17, 0.0  ;;  %v528_v47 = vmul.f32 %v2254_v51, %v308_v17  ;;  %v602_v6 = vsel %vm449_vm2, %v304_v37, %v526_v21  ;;  %v2663_v12 = vmul.f32 %v2254_v51, %v2622_v45  ;;  %1537 = vmatprep.subr.bf16.mxu0 %v1912_v1 }
 0x134   :  { %v603_v10 = vsel %vm450_vm4, %v306_v46, %v527_v16  ;;  %v2667_v9 = vmul.f32 %v2254_v51, %v2626_v63  ;;  %vm485_vm9 = vcmp.gt.f32.partialorder %v2626_v63, 0.0  ;;  %vm486_vm15 = vcmp.gt.f32.partialorder %v2647_v5, 0.0 }
 0x135   :  { %v311_v11 = vpop.f32.mrb[32].mxu0  ;;  %v604_v2 = vsel %vm451_vm7, %v308_v17, %v528_v47  ;;  %v663_v35 = vpack.c.bf16 %v603_v10, %v601_v55  ;;  %v2649_v37 = vpop.f32.mrb[32].mxu1  ;;  %v2656_v47 = vadd.f32 %v2531_v27, %v2249_v49  ;;  %v1907_v27 = vld [vmem:[%s3167_s5 + $0x58] sm:$0xff]  }
 0x136   :  { %v312_v8 = vadd.f32 %v311_v11, %v2245_v48  ;;  %v313_v13 = vpop.f32.mrb[33].mxu0  ;;  %v664_v14 = vpack.c.bf16 %v604_v2, %v602_v6  ;;  %v2658_v10 = vpop.f32.mrb[33].mxu1  ;;  %v2671_v2 = vmul.f32 %v2254_v51, %v2647_v5  ;;  %v2684_v11 = vsel %vm481_vm0, %v2553_v34, %v558_v4  ;;  %1538 = vmatpush1.bf16.msra.mxu0 %v1907_v27 }
 0x137   :  { %v314_v3 = vadd.f32 %v313_v13, %v2249_v49  ;;  %v315_v55 = vpop.f32.mrb[34].mxu0  ;;  %v2673_v6 = vpop.f32.mrb[34].mxu1  ;;  %vm487_vm11 = vcmp.gt.f32.partialorder %v2656_v47, 0.0  ;;  %v2699_v4 = vsel %vm483_vm6, %v2583_v33, %v560_v38  ;;  %v2711_v33 = vadd.f32 %v2576_v19, %v2245_v48  ;;  %1539 = vmatprep.subr.bf16.mxu0 %v1912_v1 }
 0x138   :  { %vm452_vm8 = vcmp.gt.f32.partialorder %v312_v8, 0.0  ;;  %v529_v21 = vmul.f32 %v2254_v51, %v312_v8  ;;  %v316_v17 = vadd.f32 %v315_v55, %v2245_v48  ;;  %v317_v16 = vpop.f32.mrb[35].mxu0  ;;  %993 = vmatprep.mubr.bf16.mxu1 %v664_v14  ;;  %v2686_v13 = vpop.f32.mrb[35].mxu1  ;;  %v564_v14 = vmul.f32 %v2254_v51, %v2656_v47 }
 0x139   :  { %vm453_vm10 = vcmp.gt.f32.partialorder %v314_v3, 0.0  ;;  %v530_v30 = vmul.f32 %v2254_v51, %v314_v3  ;;  %v318_v46 = vadd.f32 %v317_v16, %v2249_v49  ;;  %994 = vmatmul.mubr.bf16.gmra.mrb[64].mxu1 %v663_v35  ;;  %v2715_v38 = vadd.f32 %v2585_v28, %v2249_v49 }
 0x13a   :  { %vm454_vm12 = vcmp.gt.f32.partialorder %v316_v17, 0.0  ;;  %v531_v55 = vmul.f32 %v2254_v51, %v316_v17  ;;  %v605_v34 = vsel %vm452_vm8, %v312_v8, %v529_v21  ;;  %v1908_v8 = vld [vmem:[%s3167_s5 + $0x60] sm:$0xff]   ;;  %v2728_v19 = vsel %vm482_vm5, %v2563_v60, %v2606_v52  ;;  %v1909_v52 = vld [vmem:[%s3167_s5 + $0x68] sm:$0xff]  }
 0x13b   :  { %vm455_vm13 = vcmp.gt.f32.partialorder %v318_v46, 0.0  ;;  %v532_v18 = vmul.f32 %v2254_v51, %v318_v46  ;;  %v606_v16 = vsel %vm453_vm10, %v314_v3, %v530_v30  ;;  %v2721_v3 = vsel %vm480_vm3, %v2547_v31, %v2590_v29  ;;  %1540 = vmatpush1.bf16.msra.mxu0 %v1908_v8 }
 0x13c   :  { %v607_v21 = vsel %vm454_vm12, %v316_v17, %v531_v55  ;;  %v2732_v28 = vadd.f32 %v2596_v41, %v2245_v48  ;;  %vm488_vm0 = vcmp.gt.f32.partialorder %v2711_v33, 0.0  ;;  %vm489_vm1 = vcmp.gt.f32.partialorder %v2715_v38, 0.0  ;;  %1541 = vmatprep.subr.bf16.mxu0 %v1912_v1 }
 0x13d   :  { %v321_v27 = vpop.f32.mrb[36].mxu0  ;;  %v608_v30 = vsel %vm455_vm13, %v318_v46, %v532_v18  ;;  %v665_v35 = vpack.c.bf16 %v607_v21, %v605_v34  ;;  %v565_v18 = vmul.f32 %v2254_v51, %v2711_v33  ;;  %v566_v60 = vmul.f32 %v2254_v51, %v2715_v38 }
 0x13e   :  { %v322_v17 = vadd.f32 %v321_v27, %v2245_v48  ;;  %v323_v55 = vpop.f32.mrb[37].mxu0  ;;  %v666_v31 = vpack.c.bf16 %v608_v30, %v606_v16  ;;  %vm490_vm3 = vcmp.gt.f32.partialorder %v2732_v28, 0.0  ;;  %v567_v30 = vmul.f32 %v2254_v51, %v2732_v28 }
 0x13f   :  { %v324_v29 = vadd.f32 %v323_v55, %v2249_v49  ;;  %v325_v46 = vpop.f32.mrb[38].mxu0  ;;  %1542 = vmatpush1.bf16.msra.mxu0 %v1909_v52 }
 0x140   :  { %vm456_vm2 = vcmp.gt.f32.partialorder %v322_v17, 0.0  ;;  %v533_v34 = vmul.f32 %v2254_v51, %v322_v17  ;;  %v326_v16 = vadd.f32 %v325_v46, %v2245_v48  ;;  %v327_v21 = vpop.f32.mrb[39].mxu0  ;;  %1003 = vmatprep.mubr.bf16.mxu1 %v666_v31  ;;  %v408_v31 = vadd.f32 %v2608_v62, %v2249_v49  ;;  %1543 = vmatprep.subr.bf16.mxu0 %v1912_v1 }
 0x141   :  { %vm457_vm4 = vcmp.gt.f32.partialorder %v324_v29, 0.0  ;;  %v534_v27 = vmul.f32 %v2254_v51, %v324_v29  ;;  %v328_v8 = vadd.f32 %v327_v21, %v2249_v49  ;;  %1004 = vmatmul.mubr.bf16.gmra.mrb[68].mxu1 %v665_v35  ;;  %v638_v21 = vsel %vm485_vm9, %v2626_v63, %v2667_v9 }
 0x142   :  { %vm458_vm5 = vcmp.gt.f32.partialorder %v326_v16, 0.0  ;;  %v535_v55 = vmul.f32 %v2254_v51, %v326_v16  ;;  %v609_v41 = vsel %vm456_vm2, %v322_v17, %v533_v34  ;;  %vm491_vm7 = vcmp.gt.f32.partialorder %v408_v31, 0.0 }
 0x143   :  { %vm459_vm6 = vcmp.gt.f32.partialorder %v328_v8, 0.0  ;;  %v536_v46 = vmul.f32 %v2254_v51, %v328_v8  ;;  %v610_v39 = vsel %vm457_vm4, %v324_v29, %v534_v27  ;;  %v568_v15 = vmul.f32 %v2254_v51, %v408_v31 }
 0x144   :  { %v611_v35 = vsel %vm458_vm5, %v326_v16, %v535_v55  ;;  %v640_v17 = vsel %vm487_vm11, %v2656_v47, %v564_v14  ;;  %v412_v29 = vadd.f32 %v2649_v37, %v2245_v48  ;;  %v414_v63 = vadd.f32 %v2658_v10, %v2249_v49 }
 0x145   :  { %v612_v62 = vsel %vm459_vm6, %v328_v8, %v536_v46  ;;  %v667_v34 = vpack.c.bf16 %v611_v35, %v609_v41  ;;  %v682_v57 = vpack.c.bf16 %v640_v17, %v638_v21  ;;  %v637_v9 = vsel %vm484_vm14, %v2622_v45, %v2663_v12 }
 0x146   :  { %v668_v27 = vpack.c.bf16 %v612_v62, %v610_v39  ;;  %v639_v47 = vsel %vm486_vm15, %v2647_v5, %v2671_v2  ;;  %vm492_vm8 = vcmp.gt.f32.partialorder %v412_v29, 0.0  ;;  %v569_v14 = vmul.f32 %v2254_v51, %v412_v29 }
 0x147   :  { %v681_v41 = vpack.c.bf16 %v639_v47, %v637_v9  ;;  %v416_v39 = vadd.f32 %v2673_v6, %v2245_v48  ;;  %vm493_vm9 = vcmp.gt.f32.partialorder %v414_v63, 0.0  ;;  %v570_v37 = vmul.f32 %v2254_v51, %v414_v63 }
 0x148   :  { %1013 = vmatprep.mubr.bf16.mxu1 %v668_v27  ;;  %v418_v10 = vadd.f32 %v2686_v13, %v2249_v49  ;;  %v642_v45 = vsel %vm489_vm1, %v2715_v38, %v566_v60  ;;  %v644_v12 = vsel %vm491_vm7, %v408_v31, %v568_v15  ;;  %v641_v48 = vsel %vm488_vm0, %v2711_v33, %v565_v18 }
 0x149   :  { %1014 = vmatmul.mubr.bf16.gmra.mrb[72].mxu1 %v667_v34  ;;  %vm494_vm10 = vcmp.gt.f32.partialorder %v416_v39, 0.0  ;;  %v571_v5 = vmul.f32 %v2254_v51, %v416_v39  ;;  %v3173_v2 = vpack.c.bf16 %v2287_v43, %v2281_v32  ;;  %v684_v6 = vpack.c.bf16 %v644_v12, %v642_v45 }
 0x14a   :  { %vm495_vm11 = vcmp.gt.f32.partialorder %v418_v10, 0.0  ;;  %v572_v49 = vmul.f32 %v2254_v51, %v418_v10  ;;  %v643_v13 = vsel %vm490_vm3, %v2732_v28, %v567_v30  ;;  %v646_v60 = vsel %vm493_vm9, %v414_v63, %v570_v37  ;;  %v1910_v28 = vld [vmem:[%s3167_s5 + $0x70] sm:$0xff]  }
 0x14b   :  { %1023 = vmatprep.mubr.bf16.mxu1 %v3173_v2  ;;  %v683_v38 = vpack.c.bf16 %v643_v13, %v641_v48  ;;  %v645_v15 = vsel %vm492_vm8, %v412_v29, %v569_v14  ;;  %v647_v52 = vsel %vm494_vm10, %v416_v39, %v571_v5  ;;  %v3174_v32 = vpack.c.bf16 %v2300_v0, %v2294_v58  ;;  %v1911_v58 = vld [vmem:[%s3167_s5 + $0x78] sm:$0xff]  }
 0x14c   :  { %v648_v16 = vsel %vm495_vm11, %v418_v10, %v572_v49  ;;  %v685_v8 = vpack.c.bf16 %v647_v52, %v645_v15  ;;  %v3175_v43 = vpack.c.bf16 %v2328_v25, %v2325_v24  ;;  %v3176_v18 = vpack.c.bf16 %v2380_v7, %v2368_v59  ;;  %1544 = vmatpush1.bf16.msra.mxu0 %v1910_v28 }
 0x14d   :  { %v686_v33 = vpack.c.bf16 %v648_v16, %v646_v60  ;;  %v3177_v30 = vpack.c.bf16 %v2427_v42, %v2413_v26  ;;  %1545 = vmatprep.subr.bf16.mxu0 %v1912_v1  ;;  %v3178_v0 = vpack.c.bf16 %v2455_v50, %v2437_v54  ;;  %v3179_v24 = vpack.c.bf16 %v2499_v53, %v2496_v23  ;;  %v719_v42 = vld [vmem:[%s3168_s4] sm:$0x3] }
 0x14e   :  { %v3180_v25 = vpack.c.bf16 %v2540_v40, %v2529_v20  ;;  %v3181_v1 = vpack.c.bf16 %v2574_v22, %v2569_v61  ;;  %v3182_v59 = vpack.c.bf16 %v2643_v36, %v2637_v56  ;;  %v3183_v7 = vpack.c.bf16 %v2699_v4, %v2684_v11 }
 0x14f   :  { %v3184_v26 = vpack.c.bf16 %v2728_v19, %v2721_v3  ;;  %v3185_v36 = vsub.s32 0, %v2236_v44  ;;  %v3186_v50 = vsub.s32 1, %v2236_v44 }
 0x150   :  { %1546 = vmatpush1.bf16.msra.mxu0 %v1911_v58 }
 0x151   :  { %1024 = vmatmul.mubr.bf16.gmra.mrb[76].mxu1 %v3174_v32  ;;  %v2847_v54 = vrot.slane %v719_v42, %v3185_v36  ;;  %v2851_v23 = vrot.slane %v719_v42, %v3186_v50 }
 0x152   :  { %1033 = vmatprep.mubr.bf16.mxu1 %v3175_v43 }
 0x159   :  { %1034 = vmatmul.mubr.bf16.gmra.mrb[80].mxu1 %v3176_v18 }
 0x15a   :  { %1043 = vmatprep.mubr.bf16.mxu1 %v3177_v30 }
 0x161   :  { %1044 = vmatmul.mubr.bf16.gmra.mrb[84].mxu1 %v3178_v0 }
 0x162   :  { %1053 = vmatprep.mubr.bf16.mxu1 %v3179_v24 }
 0x169   :  { %1054 = vmatmul.mubr.bf16.gmra.mrb[88].mxu1 %v3180_v25 }
 0x16a   :  { %1063 = vmatprep.mubr.bf16.mxu1 %v3181_v1 }
 0x171   :  { %1064 = vmatmul.mubr.bf16.gmra.mrb[92].mxu1 %v3182_v59 }
 0x172   :  { %1073 = vmatprep.mubr.bf16.mxu1 %v3183_v7 }
 0x179   :  { %1074 = vmatmul.mubr.bf16.gmra.mrb[96].mxu1 %v3184_v26 }
 0x17a   :  { %1083 = vmatprep.mubr.bf16.mxu1 %v682_v57 }
 0x181   :  { %1084 = vmatmul.mubr.bf16.gmra.mrb[100].mxu1 %v681_v41 }
 0x182   :  { %1093 = vmatprep.mubr.bf16.mxu1 %v684_v6 }
 0x189   :  { %1094 = vmatmul.mubr.bf16.gmra.mrb[104].mxu1 %v683_v38 }
 0x18a   :  { %1103 = vmatprep.mubr.bf16.mxu1 %v686_v33 }
 0x191   :  { %1104 = vmatmul.mubr.bf16.gmra.mrb[108].mxu1 %v685_v8 }
 0x1d4   :  { %v925_v53 = vpop.f32.mrb[36].mxu1 }
 0x1d5   :  { %v926_v57 = vadd.f32 %v925_v53, %v2847_v54  ;;  %v927_v20 = vpop.f32.mrb[37].mxu1 }
 0x1d6   :  { %v928_v40 = vadd.f32 %v927_v20, %v2851_v23  ;;  %v929_v61 = vpop.f32.mrb[38].mxu1 }
 0x1d7   :  { %v1190_v22 = vmul.f32 %v926_v57, %v2254_v51  ;;  %v930_v56 = vadd.f32 %v929_v61, %v2847_v54  ;;  %v931_v11 = vpop.f32.mrb[39].mxu1  ;;  %vm1114_vm12 = vcmp.gt.f32.partialorder %v926_v57, 0.0 }
 0x1d8   :  { %v1191_v4 = vmul.f32 %v928_v40, %v2254_v51  ;;  %v932_v3 = vadd.f32 %v931_v11, %v2851_v23  ;;  %vm1115_vm13 = vcmp.gt.f32.partialorder %v928_v40, 0.0 }
 0x1d9   :  { %vm1116_vm14 = vcmp.gt.f32.partialorder %v930_v56, 0.0  ;;  %v1192_v44 = vmul.f32 %v930_v56, %v2254_v51  ;;  %v1266_v55 = vsel %vm1114_vm12, %v926_v57, %v1190_v22 }
 0x1da   :  { %vm1117_vm15 = vcmp.gt.f32.partialorder %v932_v3, 0.0  ;;  %v1193_v19 = vmul.f32 %v932_v3, %v2254_v51  ;;  %v1267_v35 = vsel %vm1115_vm13, %v928_v40, %v1191_v4 }
 0x1db   :  { %v1268_v31 = vsel %vm1116_vm14, %v930_v56, %v1192_v44 }
 0x1dc   :  { %v1342_v46 = vpack.c.bf16 %v1268_v31, %v1266_v55  ;;  %v935_v21 = vpop.f32.mrb[40].mxu1  ;;  %v1269_v17 = vsel %vm1117_vm15, %v932_v3, %v1193_v19 }
 0x1dd   :  { %v936_v62 = vadd.f32 %v935_v21, %v2847_v54  ;;  %v937_v34 = vpop.f32.mrb[41].mxu1  ;;  %v1343_v29 = vpack.c.bf16 %v1269_v17, %v1267_v35 }
 0x1de   :  { %v938_v27 = vadd.f32 %v937_v34, %v2851_v23  ;;  %v939_v63 = vpop.f32.mrb[42].mxu1 }
 0x1df   :  { %v1194_v9 = vmul.f32 %v936_v62, %v2254_v51  ;;  %v940_v47 = vadd.f32 %v939_v63, %v2847_v54  ;;  %v941_v14 = vpop.f32.mrb[43].mxu1  ;;  %1547 = vmatprep.mubr.bf16.mxu0 %v1343_v29  ;;  %vm1118_vm0 = vcmp.gt.f32.partialorder %v936_v62, 0.0 }
 0x1e0   :  { %v1195_v41 = vmul.f32 %v938_v27, %v2254_v51  ;;  %v942_v39 = vadd.f32 %v941_v14, %v2851_v23  ;;  %1548 = vmatmul.mubr.bf16.vlgmr.msra.gmra.mrb[40].mxu0 %v1342_v46  ;;  %vm1119_vm1 = vcmp.gt.f32.partialorder %v938_v27, 0.0 }
 0x1e1   :  { %vm1120_vm2 = vcmp.gt.f32.partialorder %v940_v47, 0.0  ;;  %v1196_v37 = vmul.f32 %v940_v47, %v2254_v51  ;;  %v1270_v45 = vsel %vm1118_vm0, %v936_v62, %v1194_v9 }
 0x1e2   :  { %vm1121_vm3 = vcmp.gt.f32.partialorder %v942_v39, 0.0  ;;  %v1197_v10 = vmul.f32 %v942_v39, %v2254_v51  ;;  %v1271_v48 = vsel %vm1119_vm1, %v938_v27, %v1195_v41 }
 0x1e3   :  { %v1272_v5 = vsel %vm1120_vm2, %v940_v47, %v1196_v37 }
 0x1e4   :  { %v945_v12 = vpop.f32.mrb[44].mxu1  ;;  %v1273_v2 = vsel %vm1121_vm3, %v942_v39, %v1197_v10  ;;  %v1344_v49 = vpack.c.bf16 %v1272_v5, %v1270_v45 }
 0x1e5   :  { %v946_v6 = vadd.f32 %v945_v12, %v2847_v54  ;;  %v947_v13 = vpop.f32.mrb[45].mxu1  ;;  %v1345_v38 = vpack.c.bf16 %v1273_v2, %v1271_v48 }
 0x1e6   :  { %v948_v60 = vadd.f32 %v947_v13, %v2851_v23  ;;  %v949_v15 = vpop.f32.mrb[46].mxu1 }
 0x1e7   :  { %v1198_v52 = vmul.f32 %v946_v6, %v2254_v51  ;;  %v950_v16 = vadd.f32 %v949_v15, %v2847_v54  ;;  %v951_v8 = vpop.f32.mrb[47].mxu1  ;;  %1555 = vmatprep.mubr.bf16.mxu0 %v1345_v38  ;;  %vm1122_vm4 = vcmp.gt.f32.partialorder %v946_v6, 0.0 }
 0x1e8   :  { %v1199_v33 = vmul.f32 %v948_v60, %v2254_v51  ;;  %v952_v32 = vadd.f32 %v951_v8, %v2851_v23  ;;  %1556 = vmatmul.mubr.bf16.gmra.mrb[44].mxu0 %v1344_v49  ;;  %vm1123_vm5 = vcmp.gt.f32.partialorder %v948_v60, 0.0 }
 0x1e9   :  { %vm1124_vm6 = vcmp.gt.f32.partialorder %v950_v16, 0.0  ;;  %v1200_v43 = vmul.f32 %v950_v16, %v2254_v51  ;;  %v1274_v18 = vsel %vm1122_vm4, %v946_v6, %v1198_v52 }
 0x1ea   :  { %vm1125_vm7 = vcmp.gt.f32.partialorder %v952_v32, 0.0  ;;  %v1201_v28 = vmul.f32 %v952_v32, %v2254_v51  ;;  %v1275_v0 = vsel %vm1123_vm5, %v948_v60, %v1199_v33 }
 0x1eb   :  { %v1276_v30 = vsel %vm1124_vm6, %v950_v16, %v1200_v43 }
 0x1ec   :  { %v955_v58 = vpop.f32.mrb[48].mxu1  ;;  %v1277_v24 = vsel %vm1125_vm7, %v952_v32, %v1201_v28  ;;  %v1346_v25 = vpack.c.bf16 %v1276_v30, %v1274_v18 }
 0x1ed   :  { %v956_v1 = vadd.f32 %v955_v58, %v2847_v54  ;;  %v957_v59 = vpop.f32.mrb[49].mxu1  ;;  %v1347_v7 = vpack.c.bf16 %v1277_v24, %v1275_v0 }
 0x1ee   :  { %v958_v26 = vadd.f32 %v957_v59, %v2851_v23  ;;  %v959_v42 = vpop.f32.mrb[50].mxu1 }
 0x1ef   :  { %v1202_v36 = vmul.f32 %v956_v1, %v2254_v51  ;;  %v960_v50 = vadd.f32 %v959_v42, %v2847_v54  ;;  %v961_v53 = vpop.f32.mrb[51].mxu1  ;;  %1563 = vmatprep.mubr.bf16.mxu0 %v1347_v7  ;;  %vm1126_vm8 = vcmp.gt.f32.partialorder %v956_v1, 0.0 }
 0x1f0   :  { %v1203_v57 = vmul.f32 %v958_v26, %v2254_v51  ;;  %v962_v20 = vadd.f32 %v961_v53, %v2851_v23  ;;  %1564 = vmatmul.mubr.bf16.gmra.mrb[48].mxu0 %v1346_v25  ;;  %vm1127_vm9 = vcmp.gt.f32.partialorder %v958_v26, 0.0 }
 0x1f1   :  { %vm1128_vm10 = vcmp.gt.f32.partialorder %v960_v50, 0.0  ;;  %v1204_v40 = vmul.f32 %v960_v50, %v2254_v51  ;;  %v1278_v22 = vsel %vm1126_vm8, %v956_v1, %v1202_v36 }
 0x1f2   :  { %vm1129_vm11 = vcmp.gt.f32.partialorder %v962_v20, 0.0  ;;  %v1205_v61 = vmul.f32 %v962_v20, %v2254_v51  ;;  %v1279_v4 = vsel %vm1127_vm9, %v958_v26, %v1203_v57 }
 0x1f3   :  { %v1280_v56 = vsel %vm1128_vm10, %v960_v50, %v1204_v40 }
 0x1f4   :  { %v965_v11 = vpop.f32.mrb[52].mxu1  ;;  %v1281_v3 = vsel %vm1129_vm11, %v962_v20, %v1205_v61  ;;  %v1348_v44 = vpack.c.bf16 %v1280_v56, %v1278_v22 }
 0x1f5   :  { %v966_v19 = vadd.f32 %v965_v11, %v2847_v54  ;;  %v967_v55 = vpop.f32.mrb[53].mxu1  ;;  %v1349_v31 = vpack.c.bf16 %v1281_v3, %v1279_v4 }
 0x1f6   :  { %v968_v46 = vadd.f32 %v967_v55, %v2851_v23  ;;  %v969_v21 = vpop.f32.mrb[54].mxu1 }
 0x1f7   :  { %v1206_v35 = vmul.f32 %v966_v19, %v2254_v51  ;;  %v970_v17 = vadd.f32 %v969_v21, %v2847_v54  ;;  %v971_v62 = vpop.f32.mrb[55].mxu1  ;;  %1571 = vmatprep.mubr.bf16.mxu0 %v1349_v31  ;;  %vm1130_vm12 = vcmp.gt.f32.partialorder %v966_v19, 0.0 }
 0x1f8   :  { %v1207_v34 = vmul.f32 %v968_v46, %v2254_v51  ;;  %v972_v29 = vadd.f32 %v971_v62, %v2851_v23  ;;  %1572 = vmatmul.mubr.bf16.gmra.mrb[52].mxu0 %v1348_v44  ;;  %vm1131_vm13 = vcmp.gt.f32.partialorder %v968_v46, 0.0 }
 0x1f9   :  { %vm1132_vm14 = vcmp.gt.f32.partialorder %v970_v17, 0.0  ;;  %v1208_v27 = vmul.f32 %v970_v17, %v2254_v51  ;;  %v1282_v9 = vsel %vm1130_vm12, %v966_v19, %v1206_v35 }
 0x1fa   :  { %vm1133_vm15 = vcmp.gt.f32.partialorder %v972_v29, 0.0  ;;  %v1209_v63 = vmul.f32 %v972_v29, %v2254_v51  ;;  %v1283_v41 = vsel %vm1131_vm13, %v968_v46, %v1207_v34 }
 0x1fb   :  { %v1284_v47 = vsel %vm1132_vm14, %v970_v17, %v1208_v27 }
 0x1fc   :  { %v975_v14 = vpop.f32.mrb[56].mxu1  ;;  %v1285_v39 = vsel %vm1133_vm15, %v972_v29, %v1209_v63  ;;  %v1350_v37 = vpack.c.bf16 %v1284_v47, %v1282_v9 }
 0x1fd   :  { %v976_v10 = vadd.f32 %v975_v14, %v2847_v54  ;;  %v977_v45 = vpop.f32.mrb[57].mxu1  ;;  %v1351_v5 = vpack.c.bf16 %v1285_v39, %v1283_v41 }
 0x1fe   :  { %v978_v12 = vadd.f32 %v977_v45, %v2851_v23  ;;  %v979_v48 = vpop.f32.mrb[58].mxu1 }
 0x1ff   :  { %v1210_v2 = vmul.f32 %v976_v10, %v2254_v51  ;;  %v980_v49 = vadd.f32 %v979_v48, %v2847_v54  ;;  %v981_v6 = vpop.f32.mrb[59].mxu1  ;;  %1579 = vmatprep.mubr.bf16.mxu0 %v1351_v5  ;;  %vm1134_vm0 = vcmp.gt.f32.partialorder %v976_v10, 0.0 }
 0x200   :  { %v1211_v13 = vmul.f32 %v978_v12, %v2254_v51  ;;  %v982_v38 = vadd.f32 %v981_v6, %v2851_v23  ;;  %1580 = vmatmul.mubr.bf16.gmra.mrb[56].mxu0 %v1350_v37  ;;  %vm1135_vm1 = vcmp.gt.f32.partialorder %v978_v12, 0.0 }
 0x201   :  { %vm1136_vm2 = vcmp.gt.f32.partialorder %v980_v49, 0.0  ;;  %v1212_v60 = vmul.f32 %v980_v49, %v2254_v51  ;;  %v1286_v52 = vsel %vm1134_vm0, %v976_v10, %v1210_v2 }
 0x202   :  { %vm1137_vm3 = vcmp.gt.f32.partialorder %v982_v38, 0.0  ;;  %v1213_v15 = vmul.f32 %v982_v38, %v2254_v51  ;;  %v1287_v33 = vsel %vm1135_vm1, %v978_v12, %v1211_v13 }
 0x203   :  { %v1288_v16 = vsel %vm1136_vm2, %v980_v49, %v1212_v60 }
 0x204   :  { %v985_v8 = vpop.f32.mrb[60].mxu1  ;;  %v1289_v32 = vsel %vm1137_vm3, %v982_v38, %v1213_v15  ;;  %v1352_v43 = vpack.c.bf16 %v1288_v16, %v1286_v52 }
 0x205   :  { %v986_v28 = vadd.f32 %v985_v8, %v2847_v54  ;;  %v987_v18 = vpop.f32.mrb[61].mxu1  ;;  %v1353_v30 = vpack.c.bf16 %v1289_v32, %v1287_v33 }
 0x206   :  { %v988_v58 = vadd.f32 %v987_v18, %v2851_v23  ;;  %v989_v0 = vpop.f32.mrb[62].mxu1 }
 0x207   :  { %v1214_v24 = vmul.f32 %v986_v28, %v2254_v51  ;;  %v990_v25 = vadd.f32 %v989_v0, %v2847_v54  ;;  %v991_v1 = vpop.f32.mrb[63].mxu1  ;;  %1587 = vmatprep.mubr.bf16.mxu0 %v1353_v30  ;;  %vm1138_vm4 = vcmp.gt.f32.partialorder %v986_v28, 0.0 }
 0x208   :  { %v1215_v59 = vmul.f32 %v988_v58, %v2254_v51  ;;  %v992_v7 = vadd.f32 %v991_v1, %v2851_v23  ;;  %1588 = vmatmul.mubr.bf16.gmra.mrb[60].mxu0 %v1352_v43  ;;  %vm1139_vm5 = vcmp.gt.f32.partialorder %v988_v58, 0.0 }
 0x209   :  { %vm1140_vm6 = vcmp.gt.f32.partialorder %v990_v25, 0.0  ;;  %v1216_v26 = vmul.f32 %v990_v25, %v2254_v51  ;;  %v1290_v36 = vsel %vm1138_vm4, %v986_v28, %v1214_v24 }
 0x20a   :  { %vm1141_vm7 = vcmp.gt.f32.partialorder %v992_v7, 0.0  ;;  %v1217_v42 = vmul.f32 %v992_v7, %v2254_v51  ;;  %v1291_v57 = vsel %vm1139_vm5, %v988_v58, %v1215_v59 }
 0x20b   :  { %v1292_v50 = vsel %vm1140_vm6, %v990_v25, %v1216_v26 }
 0x20c   :  { %v995_v53 = vpop.f32.mrb[64].mxu1  ;;  %v1293_v20 = vsel %vm1141_vm7, %v992_v7, %v1217_v42  ;;  %v1354_v40 = vpack.c.bf16 %v1292_v50, %v1290_v36 }
 0x20d   :  { %v996_v61 = vadd.f32 %v995_v53, %v2847_v54  ;;  %v997_v22 = vpop.f32.mrb[65].mxu1  ;;  %v1355_v56 = vpack.c.bf16 %v1293_v20, %v1291_v57 }
 0x20e   :  { %v998_v11 = vadd.f32 %v997_v22, %v2851_v23  ;;  %v999_v4 = vpop.f32.mrb[66].mxu1 }
 0x20f   :  { %v1218_v3 = vmul.f32 %v996_v61, %v2254_v51  ;;  %v1000_v44 = vadd.f32 %v999_v4, %v2847_v54  ;;  %v1001_v19 = vpop.f32.mrb[67].mxu1  ;;  %1595 = vmatprep.mubr.bf16.mxu0 %v1355_v56  ;;  %vm1142_vm8 = vcmp.gt.f32.partialorder %v996_v61, 0.0 }
 0x210   :  { %v1219_v55 = vmul.f32 %v998_v11, %v2254_v51  ;;  %v1002_v31 = vadd.f32 %v1001_v19, %v2851_v23  ;;  %1596 = vmatmul.mubr.bf16.gmra.mrb[64].mxu0 %v1354_v40  ;;  %vm1143_vm9 = vcmp.gt.f32.partialorder %v998_v11, 0.0 }
 0x211   :  { %vm1144_vm10 = vcmp.gt.f32.partialorder %v1000_v44, 0.0  ;;  %v1220_v46 = vmul.f32 %v1000_v44, %v2254_v51  ;;  %v1294_v35 = vsel %vm1142_vm8, %v996_v61, %v1218_v3 }
 0x212   :  { %vm1145_vm11 = vcmp.gt.f32.partialorder %v1002_v31, 0.0  ;;  %v1221_v21 = vmul.f32 %v1002_v31, %v2254_v51  ;;  %v1295_v34 = vsel %vm1143_vm9, %v998_v11, %v1219_v55 }
 0x213   :  { %v1296_v17 = vsel %vm1144_vm10, %v1000_v44, %v1220_v46 }
 0x214   :  { %v1005_v62 = vpop.f32.mrb[68].mxu1  ;;  %v1297_v29 = vsel %vm1145_vm11, %v1002_v31, %v1221_v21  ;;  %v1356_v27 = vpack.c.bf16 %v1296_v17, %v1294_v35 }
 0x215   :  { %v1006_v63 = vadd.f32 %v1005_v62, %v2847_v54  ;;  %v1007_v9 = vpop.f32.mrb[69].mxu1  ;;  %v1357_v47 = vpack.c.bf16 %v1297_v29, %v1295_v34 }
 0x216   :  { %v1008_v14 = vadd.f32 %v1007_v9, %v2851_v23  ;;  %v1009_v41 = vpop.f32.mrb[70].mxu1 }
 0x217   :  { %v1222_v39 = vmul.f32 %v1006_v63, %v2254_v51  ;;  %v1010_v37 = vadd.f32 %v1009_v41, %v2847_v54  ;;  %v1011_v10 = vpop.f32.mrb[71].mxu1  ;;  %1603 = vmatprep.mubr.bf16.mxu0 %v1357_v47  ;;  %vm1146_vm12 = vcmp.gt.f32.partialorder %v1006_v63, 0.0 }
 0x218   :  { %v1223_v45 = vmul.f32 %v1008_v14, %v2254_v51  ;;  %v1012_v5 = vadd.f32 %v1011_v10, %v2851_v23  ;;  %1604 = vmatmul.mubr.bf16.gmra.mrb[68].mxu0 %v1356_v27  ;;  %vm1147_vm13 = vcmp.gt.f32.partialorder %v1008_v14, 0.0 }
 0x219   :  { %vm1148_vm14 = vcmp.gt.f32.partialorder %v1010_v37, 0.0  ;;  %v1224_v12 = vmul.f32 %v1010_v37, %v2254_v51  ;;  %v1298_v2 = vsel %vm1146_vm12, %v1006_v63, %v1222_v39 }
 0x21a   :  { %vm1149_vm15 = vcmp.gt.f32.partialorder %v1012_v5, 0.0  ;;  %v1225_v48 = vmul.f32 %v1012_v5, %v2254_v51  ;;  %v1299_v13 = vsel %vm1147_vm13, %v1008_v14, %v1223_v45 }
 0x21b   :  { %v1300_v49 = vsel %vm1148_vm14, %v1010_v37, %v1224_v12 }
 0x21c   :  { %v1015_v6 = vpop.f32.mrb[72].mxu1  ;;  %v1301_v38 = vsel %vm1149_vm15, %v1012_v5, %v1225_v48  ;;  %v1358_v60 = vpack.c.bf16 %v1300_v49, %v1298_v2 }
 0x21d   :  { %v1016_v15 = vadd.f32 %v1015_v6, %v2847_v54  ;;  %v1017_v52 = vpop.f32.mrb[73].mxu1  ;;  %v1359_v16 = vpack.c.bf16 %v1301_v38, %v1299_v13 }
 0x21e   :  { %v1018_v8 = vadd.f32 %v1017_v52, %v2851_v23  ;;  %v1019_v33 = vpop.f32.mrb[74].mxu1 }
 0x21f   :  { %v1226_v32 = vmul.f32 %v1016_v15, %v2254_v51  ;;  %v1020_v43 = vadd.f32 %v1019_v33, %v2847_v54  ;;  %v1021_v28 = vpop.f32.mrb[75].mxu1  ;;  %1611 = vmatprep.mubr.bf16.mxu0 %v1359_v16  ;;  %vm1150_vm0 = vcmp.gt.f32.partialorder %v1016_v15, 0.0 }
 0x220   :  { %v1227_v18 = vmul.f32 %v1018_v8, %v2254_v51  ;;  %v1022_v30 = vadd.f32 %v1021_v28, %v2851_v23  ;;  %1612 = vmatmul.mubr.bf16.gmra.mrb[72].mxu0 %v1358_v60  ;;  %vm1151_vm1 = vcmp.gt.f32.partialorder %v1018_v8, 0.0 }
 0x221   :  { %vm1152_vm2 = vcmp.gt.f32.partialorder %v1020_v43, 0.0  ;;  %v1228_v58 = vmul.f32 %v1020_v43, %v2254_v51  ;;  %v1302_v24 = vsel %vm1150_vm0, %v1016_v15, %v1226_v32 }
 0x222   :  { %vm1153_vm3 = vcmp.gt.f32.partialorder %v1022_v30, 0.0  ;;  %v1229_v0 = vmul.f32 %v1022_v30, %v2254_v51  ;;  %v1303_v59 = vsel %vm1151_vm1, %v1018_v8, %v1227_v18 }
 0x223   :  { %v1304_v25 = vsel %vm1152_vm2, %v1020_v43, %v1228_v58 }
 0x224   :  { %v1025_v1 = vpop.f32.mrb[76].mxu1  ;;  %v1305_v7 = vsel %vm1153_vm3, %v1022_v30, %v1229_v0  ;;  %v1360_v26 = vpack.c.bf16 %v1304_v25, %v1302_v24 }
 0x225   :  { %v1026_v42 = vadd.f32 %v1025_v1, %v2847_v54  ;;  %v1027_v36 = vpop.f32.mrb[77].mxu1  ;;  %v1361_v50 = vpack.c.bf16 %v1305_v7, %v1303_v59 }
 0x226   :  { %v1028_v53 = vadd.f32 %v1027_v36, %v2851_v23  ;;  %v1029_v57 = vpop.f32.mrb[78].mxu1 }
 0x227   :  { %v1230_v20 = vmul.f32 %v1026_v42, %v2254_v51  ;;  %v1030_v40 = vadd.f32 %v1029_v57, %v2847_v54  ;;  %v1031_v61 = vpop.f32.mrb[79].mxu1  ;;  %1619 = vmatprep.mubr.bf16.mxu0 %v1361_v50  ;;  %vm1154_vm4 = vcmp.gt.f32.partialorder %v1026_v42, 0.0 }
 0x228   :  { %v1231_v22 = vmul.f32 %v1028_v53, %v2254_v51  ;;  %v1032_v56 = vadd.f32 %v1031_v61, %v2851_v23  ;;  %1620 = vmatmul.mubr.bf16.gmra.mrb[76].mxu0 %v1360_v26  ;;  %vm1155_vm5 = vcmp.gt.f32.partialorder %v1028_v53, 0.0 }
 0x229   :  { %vm1156_vm6 = vcmp.gt.f32.partialorder %v1030_v40, 0.0  ;;  %v1232_v11 = vmul.f32 %v1030_v40, %v2254_v51  ;;  %v1306_v3 = vsel %vm1154_vm4, %v1026_v42, %v1230_v20 }
 0x22a   :  { %vm1157_vm7 = vcmp.gt.f32.partialorder %v1032_v56, 0.0  ;;  %v1233_v4 = vmul.f32 %v1032_v56, %v2254_v51  ;;  %v1307_v55 = vsel %vm1155_vm5, %v1028_v53, %v1231_v22 }
 0x22b   :  { %v1308_v44 = vsel %vm1156_vm6, %v1030_v40, %v1232_v11 }
 0x22c   :  { %v1035_v19 = vpop.f32.mrb[80].mxu1  ;;  %v1309_v31 = vsel %vm1157_vm7, %v1032_v56, %v1233_v4  ;;  %v1362_v46 = vpack.c.bf16 %v1308_v44, %v1306_v3 }
 0x22d   :  { %v1036_v21 = vadd.f32 %v1035_v19, %v2847_v54  ;;  %v1037_v35 = vpop.f32.mrb[81].mxu1  ;;  %v1363_v17 = vpack.c.bf16 %v1309_v31, %v1307_v55 }
 0x22e   :  { %v1038_v62 = vadd.f32 %v1037_v35, %v2851_v23  ;;  %v1039_v34 = vpop.f32.mrb[82].mxu1 }
 0x22f   :  { %v1234_v29 = vmul.f32 %v1036_v21, %v2254_v51  ;;  %v1040_v27 = vadd.f32 %v1039_v34, %v2847_v54  ;;  %v1041_v63 = vpop.f32.mrb[83].mxu1  ;;  %1627 = vmatprep.mubr.bf16.mxu0 %v1363_v17  ;;  %vm1158_vm8 = vcmp.gt.f32.partialorder %v1036_v21, 0.0 }
 0x230   :  { %v1235_v9 = vmul.f32 %v1038_v62, %v2254_v51  ;;  %v1042_v47 = vadd.f32 %v1041_v63, %v2851_v23  ;;  %1628 = vmatmul.mubr.bf16.gmra.mrb[80].mxu0 %v1362_v46  ;;  %vm1159_vm9 = vcmp.gt.f32.partialorder %v1038_v62, 0.0 }
 0x231   :  { %vm1160_vm10 = vcmp.gt.f32.partialorder %v1040_v27, 0.0  ;;  %v1236_v14 = vmul.f32 %v1040_v27, %v2254_v51  ;;  %v1310_v39 = vsel %vm1158_vm8, %v1036_v21, %v1234_v29 }
 0x232   :  { %vm1161_vm11 = vcmp.gt.f32.partialorder %v1042_v47, 0.0  ;;  %v1237_v41 = vmul.f32 %v1042_v47, %v2254_v51  ;;  %v1311_v45 = vsel %vm1159_vm9, %v1038_v62, %v1235_v9 }
 0x233   :  { %v1312_v37 = vsel %vm1160_vm10, %v1040_v27, %v1236_v14 }
 0x234   :  { %v1045_v10 = vpop.f32.mrb[84].mxu1  ;;  %v1313_v5 = vsel %vm1161_vm11, %v1042_v47, %v1237_v41  ;;  %v1364_v12 = vpack.c.bf16 %v1312_v37, %v1310_v39 }
 0x235   :  { %v1046_v48 = vadd.f32 %v1045_v10, %v2847_v54  ;;  %v1047_v2 = vpop.f32.mrb[85].mxu1  ;;  %v1365_v49 = vpack.c.bf16 %v1313_v5, %v1311_v45 }
 0x236   :  { %v1048_v6 = vadd.f32 %v1047_v2, %v2851_v23  ;;  %v1049_v13 = vpop.f32.mrb[86].mxu1 }
 0x237   :  { %v1238_v38 = vmul.f32 %v1046_v48, %v2254_v51  ;;  %v1050_v60 = vadd.f32 %v1049_v13, %v2847_v54  ;;  %v1051_v15 = vpop.f32.mrb[87].mxu1  ;;  %1635 = vmatprep.mubr.bf16.mxu0 %v1365_v49  ;;  %vm1162_vm12 = vcmp.gt.f32.partialorder %v1046_v48, 0.0 }
 0x238   :  { %v1239_v52 = vmul.f32 %v1048_v6, %v2254_v51  ;;  %v1052_v16 = vadd.f32 %v1051_v15, %v2851_v23  ;;  %1636 = vmatmul.mubr.bf16.gmra.mrb[84].mxu0 %v1364_v12  ;;  %vm1163_vm13 = vcmp.gt.f32.partialorder %v1048_v6, 0.0 }
 0x239   :  { %vm1164_vm14 = vcmp.gt.f32.partialorder %v1050_v60, 0.0  ;;  %v1240_v8 = vmul.f32 %v1050_v60, %v2254_v51  ;;  %v1314_v32 = vsel %vm1162_vm12, %v1046_v48, %v1238_v38 }
 0x23a   :  { %vm1165_vm15 = vcmp.gt.f32.partialorder %v1052_v16, 0.0  ;;  %v1241_v33 = vmul.f32 %v1052_v16, %v2254_v51  ;;  %v1315_v18 = vsel %vm1163_vm13, %v1048_v6, %v1239_v52 }
 0x23b   :  { %v1316_v43 = vsel %vm1164_vm14, %v1050_v60, %v1240_v8 }
 0x23c   :  { %v1055_v28 = vpop.f32.mrb[88].mxu1  ;;  %v1317_v30 = vsel %vm1165_vm15, %v1052_v16, %v1241_v33  ;;  %v1366_v58 = vpack.c.bf16 %v1316_v43, %v1314_v32 }
 0x23d   :  { %v1056_v0 = vadd.f32 %v1055_v28, %v2847_v54  ;;  %v1057_v24 = vpop.f32.mrb[89].mxu1  ;;  %v1367_v25 = vpack.c.bf16 %v1317_v30, %v1315_v18 }
 0x23e   :  { %v1058_v1 = vadd.f32 %v1057_v24, %v2851_v23  ;;  %v1059_v59 = vpop.f32.mrb[90].mxu1 }
 0x23f   :  { %v1242_v7 = vmul.f32 %v1056_v0, %v2254_v51  ;;  %v1060_v26 = vadd.f32 %v1059_v59, %v2847_v54  ;;  %v1061_v42 = vpop.f32.mrb[91].mxu1  ;;  %1643 = vmatprep.mubr.bf16.mxu0 %v1367_v25  ;;  %vm1166_vm0 = vcmp.gt.f32.partialorder %v1056_v0, 0.0 }
 0x240   :  { %v1243_v36 = vmul.f32 %v1058_v1, %v2254_v51  ;;  %v1062_v50 = vadd.f32 %v1061_v42, %v2851_v23  ;;  %1644 = vmatmul.mubr.bf16.gmra.mrb[88].mxu0 %v1366_v58  ;;  %vm1167_vm1 = vcmp.gt.f32.partialorder %v1058_v1, 0.0 }
 0x241   :  { %vm1168_vm2 = vcmp.gt.f32.partialorder %v1060_v26, 0.0  ;;  %v1244_v53 = vmul.f32 %v1060_v26, %v2254_v51  ;;  %v1318_v20 = vsel %vm1166_vm0, %v1056_v0, %v1242_v7 }
 0x242   :  { %vm1169_vm3 = vcmp.gt.f32.partialorder %v1062_v50, 0.0  ;;  %v1245_v57 = vmul.f32 %v1062_v50, %v2254_v51  ;;  %v1319_v22 = vsel %vm1167_vm1, %v1058_v1, %v1243_v36 }
 0x243   :  { %v1320_v40 = vsel %vm1168_vm2, %v1060_v26, %v1244_v53 }
 0x244   :  { %v1065_v61 = vpop.f32.mrb[92].mxu1  ;;  %v1321_v56 = vsel %vm1169_vm3, %v1062_v50, %v1245_v57  ;;  %v1368_v11 = vpack.c.bf16 %v1320_v40, %v1318_v20 }
 0x245   :  { %v1066_v4 = vadd.f32 %v1065_v61, %v2847_v54  ;;  %v1067_v3 = vpop.f32.mrb[93].mxu1  ;;  %v1369_v44 = vpack.c.bf16 %v1321_v56, %v1319_v22 }
 0x246   :  { %v1068_v19 = vadd.f32 %v1067_v3, %v2851_v23  ;;  %v1069_v55 = vpop.f32.mrb[94].mxu1 }
 0x247   :  { %v1246_v31 = vmul.f32 %v1066_v4, %v2254_v51  ;;  %v1070_v46 = vadd.f32 %v1069_v55, %v2847_v54  ;;  %v1071_v21 = vpop.f32.mrb[95].mxu1  ;;  %1651 = vmatprep.mubr.bf16.mxu0 %v1369_v44  ;;  %vm1170_vm4 = vcmp.gt.f32.partialorder %v1066_v4, 0.0 }
 0x248   :  { %v1247_v35 = vmul.f32 %v1068_v19, %v2254_v51  ;;  %v1072_v17 = vadd.f32 %v1071_v21, %v2851_v23  ;;  %1652 = vmatmul.mubr.bf16.gmra.mrb[92].mxu0 %v1368_v11  ;;  %vm1171_vm5 = vcmp.gt.f32.partialorder %v1068_v19, 0.0 }
 0x249   :  { %vm1172_vm6 = vcmp.gt.f32.partialorder %v1070_v46, 0.0  ;;  %v1248_v62 = vmul.f32 %v1070_v46, %v2254_v51  ;;  %v1322_v29 = vsel %vm1170_vm4, %v1066_v4, %v1246_v31 }
 0x24a   :  { %vm1173_vm7 = vcmp.gt.f32.partialorder %v1072_v17, 0.0  ;;  %v1249_v34 = vmul.f32 %v1072_v17, %v2254_v51  ;;  %v1323_v9 = vsel %vm1171_vm5, %v1068_v19, %v1247_v35 }
 0x24b   :  { %v1324_v27 = vsel %vm1172_vm6, %v1070_v46, %v1248_v62 }
 0x24c   :  { %v1075_v63 = vpop.f32.mrb[96].mxu1  ;;  %v1325_v47 = vsel %vm1173_vm7, %v1072_v17, %v1249_v34  ;;  %v1370_v14 = vpack.c.bf16 %v1324_v27, %v1322_v29 }
 0x24d   :  { %v1076_v41 = vadd.f32 %v1075_v63, %v2847_v54  ;;  %v1077_v39 = vpop.f32.mrb[97].mxu1  ;;  %v1371_v37 = vpack.c.bf16 %v1325_v47, %v1323_v9 }
 0x24e   :  { %v1078_v10 = vadd.f32 %v1077_v39, %v2851_v23  ;;  %v1079_v45 = vpop.f32.mrb[98].mxu1 }
 0x24f   :  { %v1250_v5 = vmul.f32 %v1076_v41, %v2254_v51  ;;  %v1080_v12 = vadd.f32 %v1079_v45, %v2847_v54  ;;  %v1081_v48 = vpop.f32.mrb[99].mxu1  ;;  %1659 = vmatprep.mubr.bf16.mxu0 %v1371_v37  ;;  %vm1174_vm8 = vcmp.gt.f32.partialorder %v1076_v41, 0.0 }
 0x250   :  { %v1251_v2 = vmul.f32 %v1078_v10, %v2254_v51  ;;  %v1082_v49 = vadd.f32 %v1081_v48, %v2851_v23  ;;  %1660 = vmatmul.mubr.bf16.gmra.mrb[96].mxu0 %v1370_v14  ;;  %vm1175_vm9 = vcmp.gt.f32.partialorder %v1078_v10, 0.0 }
 0x251   :  { %vm1176_vm10 = vcmp.gt.f32.partialorder %v1080_v12, 0.0  ;;  %v1252_v6 = vmul.f32 %v1080_v12, %v2254_v51  ;;  %v1326_v38 = vsel %vm1174_vm8, %v1076_v41, %v1250_v5 }
 0x252   :  { %vm1177_vm11 = vcmp.gt.f32.partialorder %v1082_v49, 0.0  ;;  %v1253_v13 = vmul.f32 %v1082_v49, %v2254_v51  ;;  %v1327_v52 = vsel %vm1175_vm9, %v1078_v10, %v1251_v2 }
 0x253   :  { %v1328_v60 = vsel %vm1176_vm10, %v1080_v12, %v1252_v6 }
 0x254   :  { %v1085_v15 = vpop.f32.mrb[100].mxu1  ;;  %v1329_v16 = vsel %vm1177_vm11, %v1082_v49, %v1253_v13  ;;  %v1372_v8 = vpack.c.bf16 %v1328_v60, %v1326_v38 }
 0x255   :  { %v1086_v33 = vadd.f32 %v1085_v15, %v2847_v54  ;;  %v1087_v32 = vpop.f32.mrb[101].mxu1  ;;  %v1373_v43 = vpack.c.bf16 %v1329_v16, %v1327_v52 }
 0x256   :  { %v1088_v28 = vadd.f32 %v1087_v32, %v2851_v23  ;;  %v1089_v18 = vpop.f32.mrb[102].mxu1 }
 0x257   :  { %v1254_v30 = vmul.f32 %v1086_v33, %v2254_v51  ;;  %v1090_v58 = vadd.f32 %v1089_v18, %v2847_v54  ;;  %v1091_v0 = vpop.f32.mrb[103].mxu1  ;;  %1667 = vmatprep.mubr.bf16.mxu0 %v1373_v43  ;;  %vm1178_vm12 = vcmp.gt.f32.partialorder %v1086_v33, 0.0 }
 0x258   :  { %v1255_v24 = vmul.f32 %v1088_v28, %v2254_v51  ;;  %v1092_v25 = vadd.f32 %v1091_v0, %v2851_v23  ;;  %1668 = vmatmul.mubr.bf16.gmra.mrb[100].mxu0 %v1372_v8  ;;  %vm1179_vm13 = vcmp.gt.f32.partialorder %v1088_v28, 0.0 }
 0x259   :  { %vm1180_vm14 = vcmp.gt.f32.partialorder %v1090_v58, 0.0  ;;  %v1256_v1 = vmul.f32 %v1090_v58, %v2254_v51  ;;  %v1330_v7 = vsel %vm1178_vm12, %v1086_v33, %v1254_v30 }
 0x25a   :  { %vm1181_vm15 = vcmp.gt.f32.partialorder %v1092_v25, 0.0  ;;  %v1257_v59 = vmul.f32 %v1092_v25, %v2254_v51  ;;  %v1331_v36 = vsel %vm1179_vm13, %v1088_v28, %v1255_v24 }
 0x25b   :  { %v1332_v26 = vsel %vm1180_vm14, %v1090_v58, %v1256_v1 }
 0x25c   :  { %v1095_v42 = vpop.f32.mrb[104].mxu1  ;;  %v1333_v50 = vsel %vm1181_vm15, %v1092_v25, %v1257_v59  ;;  %v1374_v53 = vpack.c.bf16 %v1332_v26, %v1330_v7 }
 0x25d   :  { %v1096_v57 = vadd.f32 %v1095_v42, %v2847_v54  ;;  %v1097_v20 = vpop.f32.mrb[105].mxu1  ;;  %v1375_v40 = vpack.c.bf16 %v1333_v50, %v1331_v36 }
 0x25e   :  { %v1098_v61 = vadd.f32 %v1097_v20, %v2851_v23  ;;  %v1099_v22 = vpop.f32.mrb[106].mxu1 }
 0x25f   :  { %v1258_v56 = vmul.f32 %v1096_v57, %v2254_v51  ;;  %v1100_v11 = vadd.f32 %v1099_v22, %v2847_v54  ;;  %v1101_v4 = vpop.f32.mrb[107].mxu1  ;;  %1675 = vmatprep.mubr.bf16.mxu0 %v1375_v40  ;;  %vm1182_vm0 = vcmp.gt.f32.partialorder %v1096_v57, 0.0 }
 0x260   :  { %v1259_v3 = vmul.f32 %v1098_v61, %v2254_v51  ;;  %v1102_v44 = vadd.f32 %v1101_v4, %v2851_v23  ;;  %1676 = vmatmul.mubr.bf16.gmra.mrb[104].mxu0 %v1374_v53  ;;  %vm1183_vm1 = vcmp.gt.f32.partialorder %v1098_v61, 0.0 }
 0x261   :  { %vm1184_vm2 = vcmp.gt.f32.partialorder %v1100_v11, 0.0  ;;  %v1260_v19 = vmul.f32 %v1100_v11, %v2254_v51  ;;  %v1334_v31 = vsel %vm1182_vm0, %v1096_v57, %v1258_v56 }
 0x262   :  { %vm1185_vm3 = vcmp.gt.f32.partialorder %v1102_v44, 0.0  ;;  %v1261_v55 = vmul.f32 %v1102_v44, %v2254_v51  ;;  %v1335_v35 = vsel %vm1183_vm1, %v1098_v61, %v1259_v3 }
 0x263   :  { %v1336_v46 = vsel %vm1184_vm2, %v1100_v11, %v1260_v19 }
 0x264   :  { %v1105_v21 = vpop.f32.mrb[108].mxu1  ;;  %v1337_v17 = vsel %vm1185_vm3, %v1102_v44, %v1261_v55  ;;  %v1376_v62 = vpack.c.bf16 %v1336_v46, %v1334_v31 }
 0x265   :  { %v1106_v34 = vadd.f32 %v1105_v21, %v2847_v54  ;;  %v1107_v29 = vpop.f32.mrb[109].mxu1  ;;  %v1377_v27 = vpack.c.bf16 %v1337_v17, %v1335_v35 }
 0x266   :  { %v1108_v63 = vadd.f32 %v1107_v29, %v2851_v23  ;;  %v1109_v9 = vpop.f32.mrb[110].mxu1 }
 0x267   :  { %v1262_v47 = vmul.f32 %v1106_v34, %v2254_v51  ;;  %v1110_v14 = vadd.f32 %v1109_v9, %v2847_v54  ;;  %v1111_v41 = vpop.f32.mrb[111].mxu1  ;;  %1683 = vmatprep.mubr.bf16.mxu0 %v1377_v27  ;;  %vm1186_vm4 = vcmp.gt.f32.partialorder %v1106_v34, 0.0 }
 0x268   :  { %v1263_v39 = vmul.f32 %v1108_v63, %v2254_v51  ;;  %v1112_v37 = vadd.f32 %v1111_v41, %v2851_v23  ;;  %1684 = vmatmul.mubr.bf16.gmra.mrb[108].mxu0 %v1376_v62  ;;  %vm1187_vm5 = vcmp.gt.f32.partialorder %v1108_v63, 0.0  ;;  %v3008_v23 = vld [vmem:[%s3169_s6] ss:$0 sm:$0xff] }
 0x269   :  { %vm1188_vm6 = vcmp.gt.f32.partialorder %v1110_v14, 0.0  ;;  %v1264_v10 = vmul.f32 %v1110_v14, %v2254_v51  ;;  %v1338_v5 = vsel %vm1186_vm4, %v1106_v34, %v1262_v47 }
 0x26a   :  { %vm1189_vm7 = vcmp.gt.f32.partialorder %v1112_v37, 0.0  ;;  %v1265_v45 = vmul.f32 %v1112_v37, %v2254_v51  ;;  %v1339_v48 = vsel %vm1187_vm5, %v1108_v63, %v1263_v39 }
 0x26b   :  { %v1340_v12 = vsel %vm1188_vm6, %v1110_v14, %v1264_v10 }
 0x26c   :  { %v1341_v2 = vsel %vm1189_vm7, %v1112_v37, %v1265_v45  ;;  %v1378_v54 = vpack.c.bf16 %v1340_v12, %v1338_v5 }
 0x26d   :  { %v1379_v49 = vpack.c.bf16 %v1341_v2, %v1339_v48 }
 0x26f   :  { %1691 = vmatprep.mubr.bf16.mxu0 %v1379_v49 }
 0x270   :  { %1692 = vmatmul.mubr.bf16.gmra.mrb[112].mxu0 %v1378_v54 }
 0x2b3   :  { %v1549_v6 = vpop.f32.mrb[40].mxu0 }
 0x2b4   :  { %v1550_v13 = vadd.f32 %v3008_v23, %v1549_v6  ;;  %v1551_v38 = vpop.f32.mrb[41].mxu0 }
 0x2b5   :  { %v1552_v60 = vpop.f32.mrb[42].mxu0 }
 0x2b6   :  { %1700 = vst [vmem:[%s3170_s8] sm:$0xff] %v1550_v13  ;;  %v1553_v51 = vadd.f32 %v3008_v23, %v1552_v60  ;;  %v1554_v15 = vpop.f32.mrb[43].mxu0 }
 0x2b8   :  { %1701 = vst [vmem:[%s3170_s8 + $0x8] sm:$0xff] %v1553_v51 }
 0x2bb   :  { %v1557_v52 = vpop.f32.mrb[44].mxu0 }
 0x2bc   :  { %v1558_v16 = vadd.f32 %v3008_v23, %v1557_v52  ;;  %v1559_v8 = vpop.f32.mrb[45].mxu0 }
 0x2bd   :  { %v1560_v33 = vpop.f32.mrb[46].mxu0 }
 0x2be   :  { %1702 = vst [vmem:[%s3170_s8 + $0x10] sm:$0xff] %v1558_v16  ;;  %v1561_v32 = vadd.f32 %v3008_v23, %v1560_v33  ;;  %v1562_v43 = vpop.f32.mrb[47].mxu0 }
 0x2c0   :  { %1703 = vst [vmem:[%s3170_s8 + $0x18] sm:$0xff] %v1561_v32 }
 0x2c3   :  { %v1565_v28 = vpop.f32.mrb[48].mxu0 }
 0x2c4   :  { %v1566_v18 = vadd.f32 %v3008_v23, %v1565_v28  ;;  %v1567_v30 = vpop.f32.mrb[49].mxu0 }
 0x2c5   :  { %v1568_v58 = vpop.f32.mrb[50].mxu0 }
 0x2c6   :  { %1704 = vst [vmem:[%s3170_s8 + $0x20] sm:$0xff] %v1566_v18  ;;  %v1569_v0 = vadd.f32 %v3008_v23, %v1568_v58  ;;  %v1570_v24 = vpop.f32.mrb[51].mxu0 }
 0x2c8   :  { %1705 = vst [vmem:[%s3170_s8 + $0x28] sm:$0xff] %v1569_v0 }
 0x2cb   :  { %v1573_v25 = vpop.f32.mrb[52].mxu0 }
 0x2cc   :  { %v1574_v1 = vadd.f32 %v3008_v23, %v1573_v25  ;;  %v1575_v59 = vpop.f32.mrb[53].mxu0 }
 0x2cd   :  { %v1576_v7 = vpop.f32.mrb[54].mxu0 }
 0x2ce   :  { %1706 = vst [vmem:[%s3170_s8 + $0x30] sm:$0xff] %v1574_v1  ;;  %v1577_v26 = vadd.f32 %v3008_v23, %v1576_v7  ;;  %v1578_v42 = vpop.f32.mrb[55].mxu0 }
 0x2d0   :  { %1707 = vst [vmem:[%s3170_s8 + $0x38] sm:$0xff] %v1577_v26 }
 0x2d3   :  { %v1581_v36 = vpop.f32.mrb[56].mxu0 }
 0x2d4   :  { %v1582_v50 = vadd.f32 %v3008_v23, %v1581_v36  ;;  %v1583_v53 = vpop.f32.mrb[57].mxu0 }
 0x2d5   :  { %v1584_v57 = vpop.f32.mrb[58].mxu0 }
 0x2d6   :  { %1708 = vst [vmem:[%s3170_s8 + $0x40] sm:$0xff] %v1582_v50  ;;  %v1585_v20 = vadd.f32 %v3008_v23, %v1584_v57  ;;  %v1586_v40 = vpop.f32.mrb[59].mxu0 }
 0x2d8   :  { %1709 = vst [vmem:[%s3170_s8 + $0x48] sm:$0xff] %v1585_v20 }
 0x2db   :  { %v1589_v61 = vpop.f32.mrb[60].mxu0 }
 0x2dc   :  { %v1590_v22 = vadd.f32 %v3008_v23, %v1589_v61  ;;  %v1591_v56 = vpop.f32.mrb[61].mxu0 }
 0x2dd   :  { %v1592_v11 = vpop.f32.mrb[62].mxu0 }
 0x2de   :  { %1710 = vst [vmem:[%s3170_s8 + $0x50] sm:$0xff] %v1590_v22  ;;  %v1593_v4 = vadd.f32 %v3008_v23, %v1592_v11  ;;  %v1594_v3 = vpop.f32.mrb[63].mxu0 }
 0x2e0   :  { %1711 = vst [vmem:[%s3170_s8 + $0x58] sm:$0xff] %v1593_v4 }
 0x2e3   :  { %v1597_v44 = vpop.f32.mrb[64].mxu0 }
 0x2e4   :  { %v1598_v19 = vadd.f32 %v3008_v23, %v1597_v44  ;;  %v1599_v55 = vpop.f32.mrb[65].mxu0 }
 0x2e5   :  { %v1600_v31 = vpop.f32.mrb[66].mxu0 }
 0x2e6   :  { %1712 = vst [vmem:[%s3170_s8 + $0x60] sm:$0xff] %v1598_v19  ;;  %v1601_v46 = vadd.f32 %v3008_v23, %v1600_v31  ;;  %v1602_v21 = vpop.f32.mrb[67].mxu0 }
 0x2e8   :  { %1713 = vst [vmem:[%s3170_s8 + $0x68] sm:$0xff] %v1601_v46 }
 0x2eb   :  { %v1605_v35 = vpop.f32.mrb[68].mxu0 }
 0x2ec   :  { %v1606_v17 = vadd.f32 %v3008_v23, %v1605_v35  ;;  %v1607_v62 = vpop.f32.mrb[69].mxu0 }
 0x2ed   :  { %v1608_v34 = vpop.f32.mrb[70].mxu0 }
 0x2ee   :  { %1714 = vst [vmem:[%s3170_s8 + $0x70] sm:$0xff] %v1606_v17  ;;  %v1609_v29 = vadd.f32 %v3008_v23, %v1608_v34  ;;  %v1610_v27 = vpop.f32.mrb[71].mxu0 }
 0x2f0   :  { %1715 = vst [vmem:[%s3170_s8 + $0x78] sm:$0xff] %v1609_v29 }
 0x2f3   :  { %v1613_v63 = vpop.f32.mrb[72].mxu0 }
 0x2f4   :  { %v1614_v9 = vadd.f32 %v3008_v23, %v1613_v63  ;;  %v1615_v47 = vpop.f32.mrb[73].mxu0 }
 0x2f5   :  { %v1616_v14 = vpop.f32.mrb[74].mxu0 }
 0x2f6   :  { %1716 = vst [vmem:[%s3170_s8 + $0x80] sm:$0xff] %v1614_v9  ;;  %v1617_v41 = vadd.f32 %v3008_v23, %v1616_v14  ;;  %v1618_v39 = vpop.f32.mrb[75].mxu0 }
 0x2f8   :  { %1717 = vst [vmem:[%s3170_s8 + $0x88] sm:$0xff] %v1617_v41 }
 0x2fb   :  { %v1621_v37 = vpop.f32.mrb[76].mxu0 }
 0x2fc   :  { %v1622_v10 = vadd.f32 %v3008_v23, %v1621_v37  ;;  %v1623_v45 = vpop.f32.mrb[77].mxu0 }
 0x2fd   :  { %v1624_v5 = vpop.f32.mrb[78].mxu0 }
 0x2fe   :  { %1718 = vst [vmem:[%s3170_s8 + $0x90] sm:$0xff] %v1622_v10  ;;  %v1625_v12 = vadd.f32 %v3008_v23, %v1624_v5  ;;  %v1626_v48 = vpop.f32.mrb[79].mxu0 }
 0x300   :  { %1719 = vst [vmem:[%s3170_s8 + $0x98] sm:$0xff] %v1625_v12 }
 0x303   :  { %v1629_v2 = vpop.f32.mrb[80].mxu0 }
 0x304   :  { %v1630_v54 = vadd.f32 %v3008_v23, %v1629_v2  ;;  %v1631_v49 = vpop.f32.mrb[81].mxu0 }
 0x305   :  { %v1632_v6 = vpop.f32.mrb[82].mxu0 }
 0x306   :  { %1720 = vst [vmem:[%s3170_s8 + $0xa0] sm:$0xff] %v1630_v54  ;;  %v1633_v13 = vadd.f32 %v3008_v23, %v1632_v6  ;;  %v1634_v38 = vpop.f32.mrb[83].mxu0 }
 0x308   :  { %1721 = vst [vmem:[%s3170_s8 + $0xa8] sm:$0xff] %v1633_v13 }
 0x30b   :  { %v1637_v60 = vpop.f32.mrb[84].mxu0 }
 0x30c   :  { %v1638_v51 = vadd.f32 %v3008_v23, %v1637_v60  ;;  %v1639_v15 = vpop.f32.mrb[85].mxu0 }
 0x30d   :  { %v1640_v52 = vpop.f32.mrb[86].mxu0 }
 0x30e   :  { %1722 = vst [vmem:[%s3170_s8 + $0xb0] sm:$0xff] %v1638_v51  ;;  %v1641_v16 = vadd.f32 %v3008_v23, %v1640_v52  ;;  %v1642_v8 = vpop.f32.mrb[87].mxu0 }
 0x310   :  { %1723 = vst [vmem:[%s3170_s8 + $0xb8] sm:$0xff] %v1641_v16 }
 0x313   :  { %v1645_v33 = vpop.f32.mrb[88].mxu0 }
 0x314   :  { %v1646_v32 = vadd.f32 %v3008_v23, %v1645_v33  ;;  %v1647_v43 = vpop.f32.mrb[89].mxu0 }
 0x315   :  { %v1648_v28 = vpop.f32.mrb[90].mxu0 }
 0x316   :  { %1724 = vst [vmem:[%s3170_s8 + $0xc0] sm:$0xff] %v1646_v32  ;;  %v1649_v18 = vadd.f32 %v3008_v23, %v1648_v28  ;;  %v1650_v30 = vpop.f32.mrb[91].mxu0 }
 0x318   :  { %1725 = vst [vmem:[%s3170_s8 + $0xc8] sm:$0xff] %v1649_v18 }
 0x31b   :  { %v1653_v58 = vpop.f32.mrb[92].mxu0 }
 0x31c   :  { %v1654_v0 = vadd.f32 %v3008_v23, %v1653_v58  ;;  %v1655_v24 = vpop.f32.mrb[93].mxu0 }
 0x31d   :  { %v1656_v25 = vpop.f32.mrb[94].mxu0 }
 0x31e   :  { %1726 = vst [vmem:[%s3170_s8 + $0xd0] sm:$0xff] %v1654_v0  ;;  %v1657_v1 = vadd.f32 %v3008_v23, %v1656_v25  ;;  %v1658_v59 = vpop.f32.mrb[95].mxu0 }
 0x320   :  { %1727 = vst [vmem:[%s3170_s8 + $0xd8] sm:$0xff] %v1657_v1 }
 0x323   :  { %v1661_v7 = vpop.f32.mrb[96].mxu0 }
 0x324   :  { %v1662_v26 = vadd.f32 %v3008_v23, %v1661_v7  ;;  %v1663_v42 = vpop.f32.mrb[97].mxu0 }
 0x325   :  { %v1664_v36 = vpop.f32.mrb[98].mxu0 }
 0x326   :  { %1728 = vst [vmem:[%s3170_s8 + $0xe0] sm:$0xff] %v1662_v26  ;;  %v1665_v50 = vadd.f32 %v3008_v23, %v1664_v36  ;;  %v1666_v53 = vpop.f32.mrb[99].mxu0 }
 0x328   :  { %1729 = vst [vmem:[%s3170_s8 + $0xe8] sm:$0xff] %v1665_v50 }
 0x32b   :  { %v1669_v57 = vpop.f32.mrb[100].mxu0 }
 0x32c   :  { %v1670_v20 = vadd.f32 %v3008_v23, %v1669_v57  ;;  %v1671_v40 = vpop.f32.mrb[101].mxu0 }
 0x32d   :  { %v1672_v61 = vpop.f32.mrb[102].mxu0 }
 0x32e   :  { %1730 = vst [vmem:[%s3170_s8 + $0xf0] sm:$0xff] %v1670_v20  ;;  %v1673_v22 = vadd.f32 %v3008_v23, %v1672_v61  ;;  %v1674_v56 = vpop.f32.mrb[103].mxu0 }
 0x330   :  { %1731 = vst [vmem:[%s3170_s8 + $0xf8] sm:$0xff] %v1673_v22 }
 0x333   :  { %v1677_v11 = vpop.f32.mrb[104].mxu0 }
 0x334   :  { %v1678_v4 = vadd.f32 %v3008_v23, %v1677_v11  ;;  %v1679_v3 = vpop.f32.mrb[105].mxu0 }
 0x335   :  { %v1680_v44 = vpop.f32.mrb[106].mxu0 }
 0x336   :  { %1732 = vst [vmem:[%s3170_s8 + $0x100] sm:$0xff] %v1678_v4  ;;  %v1681_v19 = vadd.f32 %v3008_v23, %v1680_v44  ;;  %v1682_v55 = vpop.f32.mrb[107].mxu0 }
 0x338   :  { %1733 = vst [vmem:[%s3170_s8 + $0x108] sm:$0xff] %v1681_v19 }
 0x33b   :  { %v1685_v31 = vpop.f32.mrb[108].mxu0 }
 0x33c   :  { %v1686_v46 = vadd.f32 %v3008_v23, %v1685_v31  ;;  %v1687_v21 = vpop.f32.mrb[109].mxu0 }
 0x33d   :  { %v1688_v35 = vpop.f32.mrb[110].mxu0 }
 0x33e   :  { %1734 = vst [vmem:[%s3170_s8 + $0x110] sm:$0xff] %v1686_v46  ;;  %v1689_v17 = vadd.f32 %v3008_v23, %v1688_v35  ;;  %v1690_v62 = vpop.f32.mrb[111].mxu0 }
 0x340   :  { %1735 = vst [vmem:[%s3170_s8 + $0x118] sm:$0xff] %v1689_v17 }
 0x343   :  { %v1693_v34 = vpop.f32.mrb[112].mxu0 }
 0x344   :  { %v1694_v29 = vadd.f32 %v3008_v23, %v1693_v34  ;;  %v1695_v27 = vpop.f32.mrb[113].mxu0 }
 0x345   :  { %v1696_v63 = vpop.f32.mrb[114].mxu0 }
 0x346   :  { %1736 = vst [vmem:[%s3170_s8 + $0x120] sm:$0xff] %v1694_v29  ;;  %v1697_v9 = vadd.f32 %v3008_v23, %v1696_v63  ;;  %v1698_v47 = vpop.f32.mrb[115].mxu0 }
 0x348   :  { %1737 = vst [vmem:[%s3170_s8 + $0x128] sm:$0xff] %v1697_v9 }

</bundles_post_ra>
